<compile_context>
chip_gen: v6e
topology: v6e:2x2x1
jax: 0.10.0
libtpu: 0.0.40
codegen_flags: <defaults>
</compile_context>

<pallas_src>
import functools

import jax
import jax.numpy as jnp
from jax.experimental import pallas as pl
from jax.experimental.pallas import tpu as pltpu

LAYER_NORM_EPS = 1e-12  # config.layer_norm_eps (BERT/ERNIE default)
_SUBLANE = 8


def ernie_output_kernel(x_ref, w_ref, b_ref, res_ref, gamma_ref, beta_ref,
                        o_ref, *, chunk, eps):
    """One grid step over tm rows of y = LN(dropout(x @ W + b) + residual)."""
    w = w_ref[...]        # resident weight tile [I, H] (matmul dtype)
    b = b_ref[...]        # (1, H) f32
    g = gamma_ref[...]    # (1, H) f32
    be = beta_ref[...]    # (1, H) f32
    n_chunks = x_ref.shape[0] // chunk

    def body(c, carry):
        r = pl.multiple_of(c * chunk, chunk)
        # Cast activations to the matmul dtype inside the kernel (no extra
        # wrapper-side HBM pass over the [M, I] activation stream).
        x = x_ref[pl.ds(r, chunk), :].astype(w.dtype)
        h = jnp.dot(x, w, preferred_element_type=jnp.float32)          # MXU
        # TODO(synk): dropout omitted (inference mode -> identity).
        h = h + b + res_ref[pl.ds(r, chunk), :].astype(jnp.float32)

        # LayerNorm over the last (lane) axis, per row. Two-pass variance
        # (subtract mean first) avoids the E[h^2]-mean^2 cancellation that
        # can go slightly negative and NaN the rsqrt with eps=1e-12.
        mean = jnp.mean(h, axis=-1, keepdims=True)
        centered = h - mean
        var = jnp.mean(centered * centered, axis=-1, keepdims=True)
        inv = jax.lax.rsqrt(var + eps)                                   # EUP
        o_ref[pl.ds(r, chunk), :] = (centered * inv * g + be).astype(o_ref.dtype)
        return carry

    jax.lax.fori_loop(0, n_chunks, body, 0, unroll=True)


def _round_down(x, m):
    return (x // m) * m


def ernie_output(hidden_states, input_tensor, w, b, gamma, beta, *,
                 tm=512, chunk=128, matmul_dtype=jnp.bfloat16,
                 eps=LAYER_NORM_EPS):
    """Fused ErnieOutput forward.

    hidden_states: [..., I]  dense input
    input_tensor : [..., H]  residual
    w            : [I, H]    (transposed from PyTorch's [H, I]; ideally
                              pre-cast to matmul_dtype once at model-load time)
    b/gamma/beta : [H]
    """
    I = hidden_states.shape[-1]
    H = input_tensor.shape[-1]
    out_shape_nd = input_tensor.shape
    out_dtype = input_tensor.dtype

    x2 = hidden_states.reshape(-1, I)
    r2 = input_tensor.reshape(-1, H)
    M = x2.shape[0]

    # Grid-invariant weight cast: ideally already done at model-load time.
    if w.dtype != matmul_dtype:
        w = w.astype(matmul_dtype)
    b2 = b.reshape(1, H).astype(jnp.float32)
    g2 = gamma.reshape(1, H).astype(jnp.float32)
    be2 = beta.reshape(1, H).astype(jnp.float32)

    # ---- Row-tile selection --------------------------------------------------
    # Keep at least 2 grid steps so the ("parallel",) axis shards across both
    # TensorCores on v7x; round the tile to the sublane granule (8).
    tm = max(_SUBLANE, _round_down(min(tm, max(M // 2, _SUBLANE)), _SUBLANE))

    # ---- Generation-aware VMEM budget (~75% of physical capacity) -----------
    try:
        vmem_cap = int(pltpu.get_tpu_info().vmem_capacity_bytes)
    except Exception:
        vmem_cap = 64 * 2**20            # conservative (v7x-sized) fallback
    budget = int(0.75 * vmem_cap)

    x_bytes = jnp.dtype(x2.dtype).itemsize
    w_bytes = jnp.dtype(w.dtype).itemsize
    res_bytes = jnp.dtype(r2.dtype).itemsize
    out_bytes = jnp.dtype(out_dtype).itemsize

    def footprint(t, ck):
        return (I * H * w_bytes              # resident weight (single-buffered)
                + 2 * t * I * x_bytes        # double-buffered activation tiles
                + 2 * t * H * res_bytes      # double-buffered residual tiles
                + 2 * t * H * out_bytes      # double-buffered output tiles
                + 3 * ck * H * 4             # in-kernel f32 temporaries
                + 4 * H * 4)                 # bias / gamma / beta

    while tm > _SUBLANE and footprint(tm, min(chunk, tm)) > budget:
        tm -= _SUBLANE

    # Sub-chunk size for the in-kernel unrolled loop: multiple of 8, divides tm.
    chunk = max(_SUBLANE, _round_down(min(chunk, tm), _SUBLANE))
    while tm % chunk:
        chunk -= _SUBLANE

    vmem_limit_bytes = int(min(budget,
                               max(int(1.5 * footprint(tm, chunk)), 16 * 2**20)))

    # ---- Pad the token axis so the tile always divides (no tm collapse) -----
    grid_m = pl.cdiv(M, tm)
    m_pad = grid_m * tm
    if m_pad != M:
        x2 = jnp.pad(x2, ((0, m_pad - M), (0, 0)))
        r2 = jnp.pad(r2, ((0, m_pad - M), (0, 0)))

    invariant = dict(pipeline_mode=pl.Buffered(1))  # block index never changes

    cost = pl.CostEstimate(
        flops=2 * m_pad * I * H,
        transcendentals=m_pad,   # one rsqrt per row
        bytes_accessed=(m_pad * I * x_bytes + I * H * w_bytes
                        + m_pad * H * (res_bytes + out_bytes) + 3 * H * 4),
    )

    kernel = functools.partial(ernie_output_kernel, chunk=chunk, eps=eps)

    out = pl.pallas_call(
        kernel,
        out_shape=jax.ShapeDtypeStruct((m_pad, H), out_dtype),
        grid_spec=pltpu.PrefetchScalarGridSpec(
            num_scalar_prefetch=0,
            grid=(grid_m,),
            in_specs=[
                pl.BlockSpec((tm, I), lambda i: (i, 0)),              # activations
                pl.BlockSpec((I, H), lambda i: (0, 0), **invariant),  # weight
                pl.BlockSpec((1, H), lambda i: (0, 0), **invariant),  # bias
                pl.BlockSpec((tm, H), lambda i: (i, 0)),              # residual
                pl.BlockSpec((1, H), lambda i: (0, 0), **invariant),  # LN gamma
                pl.BlockSpec((1, H), lambda i: (0, 0), **invariant),  # LN beta
            ],
            out_specs=pl.BlockSpec((tm, H), lambda i: (i, 0)),
        ),
        compiler_params=pltpu.CompilerParams(
            dimension_semantics=("parallel",),
            vmem_limit_bytes=vmem_limit_bytes,
        ),
        cost_estimate=cost,
    )(x2, w, b2, r2, g2, be2)

    if m_pad != M:
        out = out[:M]
    return out.reshape(out_shape_nd)


def ernie_output_ref(hidden_states, input_tensor, w, b, gamma, beta,
                     matmul_dtype=jnp.bfloat16, eps=LAYER_NORM_EPS):
    # Same matmul dtype / f32 accumulation as the kernel, then f32 LN epilogue.
    h = jnp.dot(hidden_states.astype(matmul_dtype), w.astype(matmul_dtype),
                preferred_element_type=jnp.float32)
    h = h + b + input_tensor.astype(jnp.float32)
    mean = jnp.mean(h, axis=-1, keepdims=True)
    var = jnp.mean((h - mean) ** 2, axis=-1, keepdims=True)
    y = (h - mean) * jax.lax.rsqrt(var + eps) * gamma + beta
    return y.astype(input_tensor.dtype)


if __name__ == "__main__":
    # Small (but lane-dense) config: batch=2, seq=256, hidden=128, intermediate=512.
    batch, seq = 2, 256
    hidden_size, intermediate_size = 128, 512

    key = jax.random.PRNGKey(0)
    k1, k2, k3, k4, k5, k6 = jax.random.split(key, 6)

    hidden_states = jax.random.normal(k1, (batch, seq, intermediate_size),
                                      dtype=jnp.float32)
    input_tensor = jax.random.normal(k2, (batch, seq, hidden_size),
                                     dtype=jnp.float32)

    # Deterministic parameter init (synthetic, not a checkpoint).
    w = jax.random.normal(k3, (intermediate_size, hidden_size), dtype=jnp.float32) * 0.02
    b = jax.random.normal(k4, (hidden_size,), dtype=jnp.float32) * 0.02
    gamma = 1.0 + 0.1 * jax.random.normal(k5, (hidden_size,), dtype=jnp.float32)
    beta = 0.1 * jax.random.normal(k6, (hidden_size,), dtype=jnp.float32)

    # Pre-cast the weight once ("model load time") so the per-call path does
    # no extra HBM pass for dtype conversion.
    w_mm = w.astype(jnp.bfloat16)

    out = ernie_output(hidden_states, input_tensor, w_mm, b, gamma, beta)
    out = jax.block_until_ready(out)
    assert out.shape == (batch, seq, hidden_size)
    assert bool(jnp.all(jnp.isfinite(out)))

    # Main check: reference with the same bf16 matmul / f32 LN epilogue.
    ref = ernie_output_ref(hidden_states, input_tensor, w, b, gamma, beta)
    assert jnp.allclose(out, ref, atol=1e-3, rtol=1e-3)

    # Loose sanity check vs full-f32 semantics (documents the bf16 MXU
    # precision contract relative to PyTorch's f32 ErnieOutput).
    ref_f32 = ernie_output_ref(hidden_states, input_tensor, w, b, gamma, beta,
                               matmul_dtype=jnp.float32)
    assert jnp.allclose(out, ref_f32, atol=5e-2, rtol=5e-2)

    print("KERNEL_OK")
</pallas_src>

<mosaic_0001>
module attributes {stable_mosaic.version = 11 : i64} {
  func.func @ernie_output_kernel(%arg0: i32, %arg1: memref<256x512xf32, #tpu.memory_space<vmem>>, %arg2: memref<512x128xbf16, #tpu.memory_space<vmem>>, %arg3: memref<1x128xf32, #tpu.memory_space<vmem>>, %arg4: memref<256x128xf32, #tpu.memory_space<vmem>>, %arg5: memref<1x128xf32, #tpu.memory_space<vmem>>, %arg6: memref<1x128xf32, #tpu.memory_space<vmem>>, %arg7: memref<256x128xf32, #tpu.memory_space<vmem>>) attributes {dimension_semantics = [#tpu.dimension_semantics<parallel>], iteration_bounds = array<i64: 2>, scalar_prefetch = 0 : i64, scratch_operands = 0 : i64, tpu.core_type = #tpu.core_type<tc>, window_params = [{transform_indices = @transform_0, window_bounds = array<i64: 256, 512>}, {pipeline_mode = #tpu.pipeline_mode<synchronous>, transform_indices = @transform_1, window_bounds = array<i64: 512, 128>}, {pipeline_mode = #tpu.pipeline_mode<synchronous>, transform_indices = @transform_2, window_bounds = array<i64: 1, 128>}, {transform_indices = @transform_3, window_bounds = array<i64: 256, 128>}, {pipeline_mode = #tpu.pipeline_mode<synchronous>, transform_indices = @transform_4, window_bounds = array<i64: 1, 128>}, {pipeline_mode = #tpu.pipeline_mode<synchronous>, transform_indices = @transform_5, window_bounds = array<i64: 1, 128>}, {transform_indices = @transform_6, window_bounds = array<i64: 256, 128>}]} {
    %c0 = arith.constant 0 : index
    %c0_0 = arith.constant 0 : index
    %0 = vector.load %arg2[%c0, %c0_0] : memref<512x128xbf16, #tpu.memory_space<vmem>>, vector<512x128xbf16>
    %c0_1 = arith.constant 0 : index
    %c0_2 = arith.constant 0 : index
    %1 = vector.load %arg3[%c0_1, %c0_2] : memref<1x128xf32, #tpu.memory_space<vmem>>, vector<1x128xf32>
    %c0_3 = arith.constant 0 : index
    %c0_4 = arith.constant 0 : index
    %2 = vector.load %arg5[%c0_3, %c0_4] : memref<1x128xf32, #tpu.memory_space<vmem>>, vector<1x128xf32>
    %c0_5 = arith.constant 0 : index
    %c0_6 = arith.constant 0 : index
    %3 = vector.load %arg6[%c0_5, %c0_6] : memref<1x128xf32, #tpu.memory_space<vmem>>, vector<1x128xf32>
    %c0_i32 = arith.constant 0 : i32
    %c128_i32 = arith.constant 128 : i32
    %4 = arith.muli %c0_i32, %c128_i32 : i32
    %5 = tpu.assume_multiple %4, 128 : i32
    %6 = arith.index_cast %5 : i32 to index
    %c0_7 = arith.constant 0 : index
    %7 = vector.load %arg1[%6, %c0_7] : memref<256x512xf32, #tpu.memory_space<vmem>>, vector<128x512xf32>
    %8 = arith.truncf %7 : vector<128x512xf32> to vector<128x512xbf16>
    %cst = arith.constant dense<0.000000e+00> : vector<128x128xf32>
    %9 = tpu.matmul %8, %0, %cst {dimension_numbers = #tpu.dot_dimension_numbers<[1], [0], [0], [1], [0, 0, 1, 1], [], []>} : vector<128x512xbf16>, vector<512x128xbf16>, vector<128x128xf32> -> vector<128x128xf32>
    %10 = vector.broadcast %1 : vector<1x128xf32> to vector<128x128xf32>
    %11 = arith.addf %9, %10 : vector<128x128xf32>
    %12 = arith.index_cast %5 : i32 to index
    %c0_8 = arith.constant 0 : index
    %13 = vector.load %arg4[%12, %c0_8] : memref<256x128xf32, #tpu.memory_space<vmem>>, vector<128x128xf32>
    %14 = arith.addf %11, %13 : vector<128x128xf32>
    %cst_9 = arith.constant dense<0.000000e+00> : vector<128xf32>
    %15 = vector.multi_reduction <add>, %14, %cst_9 [1] : vector<128x128xf32> to vector<128xf32>
    %16 = vector.shape_cast %15 : vector<128xf32> to vector<128x1xf32>
    %cst_10 = arith.constant 1.280000e+02 : f32
    %17 = vector.broadcast %cst_10 : f32 to vector<128x1xf32>
    %18 = arith.divf %16, %17 : vector<128x1xf32>
    %19 = vector.broadcast %18 : vector<128x1xf32> to vector<128x128xf32>
    %20 = arith.subf %14, %19 : vector<128x128xf32>
    %21 = arith.mulf %20, %20 : vector<128x128xf32>
    %cst_11 = arith.constant dense<0.000000e+00> : vector<128xf32>
    %22 = vector.multi_reduction <add>, %21, %cst_11 [1] : vector<128x128xf32> to vector<128xf32>
    %23 = vector.shape_cast %22 : vector<128xf32> to vector<128x1xf32>
    %cst_12 = arith.constant 1.280000e+02 : f32
    %24 = vector.broadcast %cst_12 : f32 to vector<128x1xf32>
    %25 = arith.divf %23, %24 : vector<128x1xf32>
    %cst_13 = arith.constant 9.99999996E-13 : f32
    %26 = vector.broadcast %cst_13 : f32 to vector<128x1xf32>
    %27 = arith.addf %25, %26 : vector<128x1xf32>
    %28 = math.rsqrt %27 : vector<128x1xf32>
    %29 = vector.broadcast %28 : vector<128x1xf32> to vector<128x128xf32>
    %30 = arith.mulf %20, %29 : vector<128x128xf32>
    %31 = vector.broadcast %2 : vector<1x128xf32> to vector<128x128xf32>
    %32 = arith.mulf %30, %31 : vector<128x128xf32>
    %33 = vector.broadcast %3 : vector<1x128xf32> to vector<128x128xf32>
    %34 = arith.addf %32, %33 : vector<128x128xf32>
    %35 = arith.index_cast %5 : i32 to index
    %c0_14 = arith.constant 0 : index
    %36 = vector.load %arg7[%35, %c0_14] : memref<256x128xf32, #tpu.memory_space<vmem>>, vector<128x128xf32>
    tpu.vector_store %arg7[%35, %c0_14], %34 {strides = array<i32>} : memref<256x128xf32, #tpu.memory_space<vmem>>, vector<128x128xf32>,
    %c1_i32 = arith.constant 1 : i32
    %c128_i32_15 = arith.constant 128 : i32
    %37 = arith.muli %c1_i32, %c128_i32_15 : i32
    %38 = tpu.assume_multiple %37, 128 : i32
    %39 = arith.index_cast %38 : i32 to index
    %c0_16 = arith.constant 0 : index
    %40 = vector.load %arg1[%39, %c0_16] : memref<256x512xf32, #tpu.memory_space<vmem>>, vector<128x512xf32>
    %41 = arith.truncf %40 : vector<128x512xf32> to vector<128x512xbf16>
    %cst_17 = arith.constant dense<0.000000e+00> : vector<128x128xf32>
    %42 = tpu.matmul %41, %0, %cst_17 {dimension_numbers = #tpu.dot_dimension_numbers<[1], [0], [0], [1], [0, 0, 1, 1], [], []>} : vector<128x512xbf16>, vector<512x128xbf16>, vector<128x128xf32> -> vector<128x128xf32>
    %43 = vector.broadcast %1 : vector<1x128xf32> to vector<128x128xf32>
    %44 = arith.addf %42, %43 : vector<128x128xf32>
    %45 = arith.index_cast %38 : i32 to index
    %c0_18 = arith.constant 0 : index
    %46 = vector.load %arg4[%45, %c0_18] : memref<256x128xf32, #tpu.memory_space<vmem>>, vector<128x128xf32>
    %47 = arith.addf %44, %46 : vector<128x128xf32>
    %cst_19 = arith.constant dense<0.000000e+00> : vector<128xf32>
    %48 = vector.multi_reduction <add>, %47, %cst_19 [1] : vector<128x128xf32> to vector<128xf32>
    %49 = vector.shape_cast %48 : vector<128xf32> to vector<128x1xf32>
    %cst_20 = arith.constant 1.280000e+02 : f32
    %50 = vector.broadcast %cst_20 : f32 to vector<128x1xf32>
    %51 = arith.divf %49, %50 : vector<128x1xf32>
    %52 = vector.broadcast %51 : vector<128x1xf32> to vector<128x128xf32>
    %53 = arith.subf %47, %52 : vector<128x128xf32>
    %54 = arith.mulf %53, %53 : vector<128x128xf32>
    %cst_21 = arith.constant dense<0.000000e+00> : vector<128xf32>
    %55 = vector.multi_reduction <add>, %54, %cst_21 [1] : vector<128x128xf32> to vector<128xf32>
    %56 = vector.shape_cast %55 : vector<128xf32> to vector<128x1xf32>
    %cst_22 = arith.constant 1.280000e+02 : f32
    %57 = vector.broadcast %cst_22 : f32 to vector<128x1xf32>
    %58 = arith.divf %56, %57 : vector<128x1xf32>
    %cst_23 = arith.constant 9.99999996E-13 : f32
    %59 = vector.broadcast %cst_23 : f32 to vector<128x1xf32>
    %60 = arith.addf %58, %59 : vector<128x1xf32>
    %61 = math.rsqrt %60 : vector<128x1xf32>
    %62 = vector.broadcast %61 : vector<128x1xf32> to vector<128x128xf32>
    %63 = arith.mulf %53, %62 : vector<128x128xf32>
    %64 = vector.broadcast %2 : vector<1x128xf32> to vector<128x128xf32>
    %65 = arith.mulf %63, %64 : vector<128x128xf32>
    %66 = vector.broadcast %3 : vector<1x128xf32> to vector<128x128xf32>
    %67 = arith.addf %65, %66 : vector<128x128xf32>
    %68 = arith.index_cast %38 : i32 to index
    %c0_24 = arith.constant 0 : index
    %69 = vector.load %arg7[%68, %c0_24] : memref<256x128xf32, #tpu.memory_space<vmem>>, vector<128x128xf32>
    tpu.vector_store %arg7[%68, %c0_24], %67 {strides = array<i32>} : memref<256x128xf32, #tpu.memory_space<vmem>>, vector<128x128xf32>,
    %c2_i32 = arith.constant 2 : i32
    return
  }
  func.func @transform_0(%arg0: i32) -> (i32, i32) {
    %c0_i32 = arith.constant 0 : i32
    %c0_i32_0 = arith.constant 0 : i32
    return %arg0, %c0_i32 : i32, i32
  }
  func.func @transform_1(%arg0: i32) -> (i32, i32) {
    %c0_i32 = arith.constant 0 : i32
    %c0_i32_0 = arith.constant 0 : i32
    %c0_i32_1 = arith.constant 0 : i32
    return %c0_i32, %c0_i32_0 : i32, i32
  }
  func.func @transform_2(%arg0: i32) -> (i32, i32) {
    %c0_i32 = arith.constant 0 : i32
    %c0_i32_0 = arith.constant 0 : i32
    %c0_i32_1 = arith.constant 0 : i32
    return %c0_i32, %c0_i32_0 : i32, i32
  }
  func.func @transform_3(%arg0: i32) -> (i32, i32) {
    %c0_i32 = arith.constant 0 : i32
    %c0_i32_0 = arith.constant 0 : i32
    return %arg0, %c0_i32 : i32, i32
  }
  func.func @transform_4(%arg0: i32) -> (i32, i32) {
    %c0_i32 = arith.constant 0 : i32
    %c0_i32_0 = arith.constant 0 : i32
    %c0_i32_1 = arith.constant 0 : i32
    return %c0_i32, %c0_i32_0 : i32, i32
  }
  func.func @transform_5(%arg0: i32) -> (i32, i32) {
    %c0_i32 = arith.constant 0 : i32
    %c0_i32_0 = arith.constant 0 : i32
    %c0_i32_1 = arith.constant 0 : i32
    return %c0_i32, %c0_i32_0 : i32, i32
  }
  func.func @transform_6(%arg0: i32) -> (i32, i32) {
    %c0_i32 = arith.constant 0 : i32
    %c0_i32_0 = arith.constant 0 : i32
    return %arg0, %c0_i32 : i32, i32
  }
}

</mosaic_0001>

<bundles_post_ra>
// kernel: tpu_custom_call.1
= control target key start
LH: loop header
LB: loop body
LE: loop exit
PB: predicated region body
PF: predicated region fallthrough
CT: control target
= control target key end

     0   :  { %s3562_s0 = inlined_call_operand.hbm [shape: f32[512,512], index: 0, kind: input, shape index: {}]   ;;  %s3563_s1 = inlined_call_operand.hbm [shape: bf16[512,128], index: 1, kind: input, shape index: {}]   ;;  %s3564_s2 = inlined_call_operand.vmem [shape: f32[1,128], index: 2, kind: input, shape index: {}]   ;;  %s3565_s3 = inlined_call_operand.hbm [shape: f32[512,128], index: 3, kind: input, shape index: {}]   ;;  %s3566_s4 = inlined_call_operand.vmem [shape: f32[1,128], index: 4, kind: input, shape index: {}]   ;;  %s3567_s5 = inlined_call_operand.vmem [shape: f32[1,128], index: 5, kind: input, shape index: {}]   ;;  %s3568_s6 = inlined_call_operand.hbm [shape: f32[512,128], index: 6, kind: output, shape index: {}]  }
   0x1   :  { %3574 = sst [smem:[#allocation15_spill]] %s3562_s0 }
   0x2   :  { %11 = vsyncpa [#allocation3], 0 }
   0x3   :  { %13 = vsyncpa [#allocation3 + $0x1], 0 }
   0x4   :  { %14 = vsyncpa [#allocation6], 0 }
   0x5   :  { %15 = vsyncpa [#allocation4], 0 }
   0x6   :  { %17 = vsyncpa [#allocation4 + $0x1], 0  ;;  %s2604_s21 = smov 0   ;;  %s2606_s22 = smov 0  }
   0x7   :  { %s2608_s23 = smov 0   ;;  %s2610_s24 = smov 0  }
   0x8 LB: > { %3575 = sst [smem:[#allocation13_spill]] %s2551_s23  ;;  %s2625_s25 = sadd.s32 1, %s2555_s24   ;;  %s2555_s24 = sphi %s2610_s24, %s3597_s24   ;;  %s2551_s23 = sphi %s2608_s23, %s3596_s23   ;;  %s2547_s22 = sphi %s2606_s22, %s3595_s22   ;;  %s2543_s21 = sphi %s2604_s21, %s3594_s21  }
   0x9   : > { %s30_s26 = sadd.s32 1, %s2551_s23  ;;  %s27_s27 = ssub.s32 %s2555_s24, %s2625_s25 }
   0xa   : > { %p37_p0 = scmp.ne.s32.totalorder %s2551_s23, %s2547_s22  ;;  %p28_p1 = scmp.eq.s32.totalorder %s27_s27, 0 }
   0xb   : > { %p38_p2 = scmp.eq.s32.totalorder %s2555_s24, 0  ;;  %p2261_p4 = scmp.lt.s32.totalorder %s2555_s24, 2 }
   0xc   : > { %s2636_s28 = scalar_select %p28_p1, %s2551_s23, %s30_s26  }
   0xd   : > { %p39_p5 = por %p38_p2, %p37_p0  ;;  %s225_s29 = sand.u32 1, %s2555_s24  }
   0xe   : > { %3576 = sst [smem:[#allocation14_spill]] %s2636_s28  ;;  %s227_s30 = sand.u32 1, %s2551_s23  }
   0xf   : > { %s1827_s7 = sshll.u32 %s227_s30, 10  ;;  %s1976_s8 = sshll.u32 %s2555_s24, 14 }
  0x10   : > { %s3577_s0 = sld [smem:[#allocation15_spill]]  ;;  %s229_s12 = scalar_lea.vmem [#allocation2], %s1827_s7 }
  0x11   : > { %s237_s13 = sshll.u32 %s229_s12, 4  ;;  %p2651_p6 = pnand %p2261_p4, %p39_p5  ;;  %s2655_s13 = int_to_ptr.vmem [resolvable:$true] %s237_s13 }
  0x12   : > { %s2657_s15 = scalar_lea.sflag [#allocation3], %s225_s29 }
  0x13   : > { %p3569_p8 = pneg %p2651_p6 }
  0x16   : > { %s2649_s11 = scalar_lea.hbm %s3577_s0, %s1976_s8  ;;  %s2406_s19 = scalar_lea.hbm %s3577_s0, 32768 }
  0x17   : > { %s2401_s16 = scalar_lea.hbm %s2649_s11, 16384  ;;  %p2407_p11 = scmp.lt.s32.totalorder %s2649_s11, %s3577_s0 }
  0x18   : > { %p2402_p7 = scmp.ne.s32.totalorder %s2649_s11, %s2401_s16  ;;  %p2408_p12 = scmp.lt.s32.totalorder %s2406_s19, %s2401_s16 }
  0x1a   : > { %p2404_p9 = pnand %p3569_p8, %p2402_p7  ;;  %p2409_p13 = por %p2408_p12, %p2407_p11 }
  0x1c   : > { %p2405_p10 = pneg %p2404_p9 }
  0x1e   : > { %p2410_p1 = pnand %p2409_p13, %p2405_p10 }
  0x20   : > { %2413 = shalt.err (!%p2410_p1)
}
  0x21   : > { %s2414_s27 = scalar_lea.vmem %s2655_s13, 16384  ;;  %s2557_s29 = smov [#allocation2]  }
  0x22   : > { %p2415_p2 = scmp.ne.s32.totalorder %s2655_s13, %s2414_s27  ;;  %s2419_s7 = sshll.u32 %s2557_s29, 4  ;;  %s2420_s7 = int_to_ptr.vmem [resolvable:$false] %s2419_s7 }
  0x23   : > { %s2421_s8 = scalar_lea.vmem %s2420_s7, 32768  ;;  %p2422_p7 = scmp.lt.s32.totalorder %s2655_s13, %s2420_s7 }
  0x24   : > { %p2417_p4 = pnand %p2415_p2, %p3569_p8  ;;  %p2423_p9 = scmp.lt.s32.totalorder %s2421_s8, %s2414_s27 }
  0x26   : > { %p2418_p5 = pneg %p2417_p4  ;;  %p2424_p3 = por %p2423_p9, %p2422_p7 }
  0x28   : > { %p2425_p11 = pnand %p2424_p3, %p2418_p5 }
  0x2a   : > { %2428 = shalt.err (!%p2425_p11)
}
  0x2b   : > { %s2558_s9 = smov 512   ;;  %s2559_s10 = smov 32  }
  0x2c   : > { %2252 = dma.hbm_to_vmem [thread:$0]  (!%p2651_p6), %s2649_s11, 16384, %s2655_s13, %s2657_s15, %s2558_s9, %s2558_s9, %s2559_s10  }
  0x2d   : > { %s1831_s12 = sshll.u32 %s227_s30, 8  ;;  %s2687_s18 = sadd.s32 4294967295, %s2555_s24  }
  0x2e   : > { %s251_s16 = scalar_lea.vmem [#allocation7], %s1831_s12  ;;  %s1823_s19 = sadd.s32 4294967294, %s2555_s24  }
  0x2f   : > { %s258_s17 = sshll.u32 %s251_s16, 4  ;;  %p43_p3 = scmp.ne.s32.totalorder %s2547_s22, %s2543_s21  ;;  %s2720_s17 = int_to_ptr.vmem [resolvable:$true] %s258_s17 }
  0x30   : > { %p3572_p10 = scmp.eq.s32.totalorder %s2687_s18, 0  ;;  %p177_p12 = scmp.eq.s32.totalorder %s2687_s18, 1 }
  0x31   : > { %p183_p13 = scmp.eq.s32.totalorder %s1823_s19, 1  ;;  %p1824_p1 = scmp.ge.s32.totalorder %s2555_s24, 1 }
  0x32   : > { %p2697_p2 = por %p3572_p10, %p43_p3  ;;  %p2704_p4 = por %p177_p12, %p37_p0 }
  0x33   : > { %p2708_p5 = por %p183_p13, %p43_p3  ;;  %p190_p7 = scmp.lt.s32.totalorder %s2555_s24, 3 }
  0x34   : > { %s3579_s11 = scalar_select %p2697_p2, 1, 0 }
  0x35   : > { %s3580_s30 = scalar_select %p2704_p4, 1, 0 }
  0x36   : > { %s3581_s13 = scalar_select %p2708_p5, 1, 0 }
  0x37   : > { %p2713_p9 = pnand %p1824_p1, %p190_p7  ;;  %s2560_s26 = smov [#allocation5]  }
  0x38   : > { %s202_s27 = sshll.u32 %s2560_s26, 4  ;;  %s1977_s29 = sshll.u32 %s2555_s24, 12  ;;  %s203_s27 = int_to_ptr.vmem [resolvable:$true] %s202_s27 }
  0x39   : > { %p2245_p11 = pneg %p2713_p9  ;;  %s2731_s10 = scalar_lea.hbm %s3565_s3, %s1977_s29 }
  0x3a   : > { %s2440_s12 = scalar_lea.vmem %s203_s27, 4096  ;;  %p2448_p7 = scmp.lt.s32.totalorder %s203_s27, %s203_s27 }
  0x3b   : > { %p2724_p0 = pnand %p2245_p11, %p3572_p10  ;;  %p2441_p12 = scmp.ne.s32.totalorder %s203_s27, %s2440_s12 }
  0x3c   : > { %p2449_p8 = scmp.lt.s32.totalorder %s2440_s12, %s2440_s12 }
  0x3d   : > { %p2431_p3 = pneg %p2724_p0 }
  0x3e   : > { %p2450_p5 = por %p2449_p8, %p2448_p7 }
  0x3f   : > { %p2443_p13 = pnand %p2441_p12, %p2431_p3 }
  0x41   : > { %p2444_p1 = pneg %p2443_p13 }
  0x43   : > { %p2451_p4 = pnand %p2450_p5, %p2444_p1 }
  0x45   : > { %2454 = shalt.err (!%p2451_p4)
}
  0x46   : > { %s2561_s16 = smov 64   ;;  %s2562_s19 = smov 4  }
  0x47   : > { %2248 = dma.hbm_to_vmem [thread:$0]  (!%p2724_p0), %s3563_s1, 4096, %s203_s27, [#allocation6], %s2561_s16, %s2561_s16, %s2562_s19  }
  0x48   : > { %s2455_s8 = scalar_lea.hbm %s2731_s10, 4096  ;;  %p3584_p3 = pneg %p2651_p6 }
  0x49   : > { %p2456_p11 = scmp.ne.s32.totalorder %s2731_s10, %s2455_s8  ;;  %s2460_s0 = scalar_lea.hbm %s3565_s3, 8192 }
  0x4a   : > { %p2461_p4 = scmp.lt.s32.totalorder %s2731_s10, %s3565_s3  ;;  %p2462_p5 = scmp.lt.s32.totalorder %s2460_s0, %s2455_s8 }
  0x4b   : > { %p2458_p12 = pnand %p2456_p11, %p3584_p3 }
  0x4c   : > { %p2463_p13 = por %p2462_p5, %p2461_p4 }
  0x4d   : > { %p2459_p8 = pneg %p2458_p12 }
  0x4f   : > { %p2464_p1 = pnand %p2463_p13, %p2459_p8 }
  0x51   : > { %2467 = shalt.err (!%p2464_p1)
}
  0x52   : > { %s2468_s27 = scalar_lea.vmem %s2720_s17, 4096  ;;  %p3585_p7 = pmov %p3584_p3 }
  0x53   : > { %p2469_p0 = scmp.ne.s32.totalorder %s2720_s17, %s2468_s27  ;;  %s2563_s7 = smov [#allocation7]  }
  0x54   : > { %s2473_s16 = sshll.u32 %s2563_s7, 4  ;;  %s2474_s16 = int_to_ptr.vmem [resolvable:$false] %s2473_s16 }
  0x55   : > { %p2471_p11 = pnand %p2469_p0, %p3585_p7  ;;  %s2475_s19 = scalar_lea.vmem %s2474_s16, 8192 }
  0x56   : > { %p2476_p12 = scmp.lt.s32.totalorder %s2720_s17, %s2474_s16  ;;  %p2477_p10 = scmp.lt.s32.totalorder %s2475_s19, %s2468_s27 }
  0x57   : > { %p2472_p3 = pneg %p2471_p11 }
  0x58   : > { %p2478_p2 = por %p2477_p10, %p2476_p12 }
  0x5a   : > { %p2479_p4 = pnand %p2478_p2, %p2472_p3 }
  0x5c   : > { %2482 = shalt.err (!%p2479_p4)
}
  0x5d   : > { %s2564_s0 = smov 128   ;;  %s2565_s23 = smov 8  }
  0x5e   : > { %2255 = dma.hbm_to_vmem [thread:$0]  (!%p2651_p6), %s2731_s10, 4096, %s2720_s17, %s2657_s15, %s2564_s0, %s2564_s0, %s2565_s23  }
  0x5f   : > { %270 = sbr.rel (%p2713_p9) target bundleno = 788 (0x314), region = 44  ;;  %s272_s28 = sand.u32 (!%p2713_p9), 1, %s2687_s18  }
  0x60   : > { %s2767_s26 = sand.u32 (!%p2713_p9), 1, %s2547_s22   ;;  %s273_s8 = scalar_lea.sflag (!%p2713_p9), [#allocation3], %s272_s28 }
  0x61   : > { %s1835_s29 = sshll.u32 (!%p2713_p9), %s2767_s26, 10  ;;  %p3586_p10 = scmp.ne.s32.totalorder (!%p2713_p9), %s3579_s11, 0 }
  0x62   : > { %s2770_s9 = scalar_lea.vmem (!%p2713_p9), [#allocation2], %s1835_s29 }
  0x64   : > { %2526 = dma.done.wait (%p3586_p10), %s273_s8, 16384  }
  0x65   : > { %2528 = vsyncadd (%p3586_p10), %s273_s8, 4294950912  ;;  %p3587_p6 = scmp.eq.s32.totalorder %s2687_s18, 0 }
  0x67   : > { %2530 = dma.done.wait (%p3587_p6), [#allocation6], 4096   ;;  %p3588_p2 = pmov %p3587_p6 }
  0x68   : > { %s1837_s14 = sshll.u32 %s2767_s26, 8 }
  0x69   : > { %2532 = vsyncadd (%p3588_p2), [#allocation6], 4294963200  ;;  %s2783_s15 = scalar_lea.vmem [#allocation7], %s1837_s14 }
  0x6a   : > { %2534 = dma.done.wait (%p3586_p10), %s273_s8, 4096  }
  0x6b   : > { %2536 = vsyncadd (%p3586_p10), %s273_s8, 4294963200  ;;  %v2789_v0 = vld [vmem:[#allocation5 + $0x78] sm:$0xff]   ;;  %v2800_v4 = vld [vmem:[#allocation5 + $0x70] sm:$0xff]   ;;  %s3386_s7 = scalar_lea.vmem [#allocation8], %s1837_s14  ;;  %s1978_s16 = sshll.u32 %s2687_s18, 12 }
  0x6c   : > { %v2791_v1 = vld [vmem:[#allocation5 + $0xf8] sm:$0xff]   ;;  %1979 = vmatprep.subr.bf16.mxu0 %v2789_v0  ;;  %v2803_v5 = vld [vmem:[#allocation5 + $0xf0] sm:$0xff]   ;;  %v2812_v8 = vld [vmem:[#allocation5 + $0x68] sm:$0xff]   ;;  %s1719_s19 = sshll.u32 %s3386_s7, 4  ;;  %s3515_s28 = scalar_lea.hbm %s3568_s6, %s1978_s16  ;;  %s3517_s19 = int_to_ptr.vmem [resolvable:$true] %s1719_s19 }
  0x6d   : > { %v2794_v2 = vld [vmem:[#allocation5 + $0x38] sm:$0xff]   ;;  %2043 = vmatprep.subr.bf16.mxu1 %v2791_v1  ;;  %v2806_v6 = vld [vmem:[#allocation5 + $0x30] sm:$0xff]   ;;  %v2815_v9 = vld [vmem:[#allocation5 + $0xe8] sm:$0xff]   ;;  %s1706_s29 = scalar_lea.sflag [#allocation4], %s2767_s26  ;;  %s2483_s8 = scalar_lea.vmem %s3517_s19, 4096 }
  0x6e   : > { %v2797_v3 = vld [vmem:[#allocation5 + $0xb8] sm:$0xff]   ;;  %1980 = vmatpush3.bf16.msra.mxu0 %v2794_v2  ;;  %v2809_v7 = vld [vmem:[#allocation5 + $0xb0] sm:$0xff]   ;;  %v2818_v10 = vld [vmem:[#allocation5 + $0x28] sm:$0xff]   ;;  %p2484_p9 = scmp.ne.s32.totalorder %s3517_s19, %s2483_s8  ;;  %p3589_p8 = scmp.ne.s32.totalorder %s3580_s30, 0 }
  0x6f   : > { %2044 = vmatpush3.bf16.msra.mxu1 %v2797_v3  ;;  %1981 = vmatprep.subr.bf16.mxu0 %v2800_v4  ;;  %v2821_v11 = vld [vmem:[#allocation5 + $0xa8] sm:$0xff]   ;;  %v2824_v12 = vld [vmem:[#allocation5 + $0x60] sm:$0xff]   ;;  %v2836_v16 = vld [vmem:[#allocation5 + $0x58] sm:$0xff]   ;;  %s2566_s18 = smov [#allocation8]  }
  0x70   : > { %2045 = vmatprep.subr.bf16.mxu1 %v2803_v5  ;;  %v2827_v13 = vld [vmem:[#allocation5 + $0xe0] sm:$0xff]   ;;  %v2839_v17 = vld [vmem:[#allocation5 + $0xd8] sm:$0xff]   ;;  %v2848_v20 = vld [vmem:[#allocation5 + $0x50] sm:$0xff]   ;;  %p2485_p5 = pnand %p2484_p9, %p3589_p8 }
  0x71   : > { %v2830_v14 = vld [vmem:[#allocation5 + $0x20] sm:$0xff]   ;;  %v2842_v18 = vld [vmem:[#allocation5 + $0x18] sm:$0xff]   ;;  %v2851_v21 = vld [vmem:[#allocation5 + $0xd0] sm:$0xff]  }
  0x72   : > { %1982 = vmatpush3.bf16.msra.mxu0 %v2806_v6  ;;  %v2833_v15 = vld [vmem:[#allocation5 + $0xa0] sm:$0xff]   ;;  %v2845_v19 = vld [vmem:[#allocation5 + $0x98] sm:$0xff]   ;;  %v2854_v22 = vld [vmem:[#allocation5 + $0x10] sm:$0xff]   ;;  %p2486_p13 = pneg %p2485_p5 }
  0x73   : > { %2046 = vmatpush3.bf16.msra.mxu1 %v2809_v7  ;;  %1983 = vmatprep.subr.bf16.mxu0 %v2812_v8  ;;  %v2857_v23 = vld [vmem:[#allocation5 + $0x90] sm:$0xff]   ;;  %v2860_v24 = vld [vmem:[#allocation5 + $0x48] sm:$0xff]   ;;  %v2872_v28 = vld [vmem:[#allocation5 + $0x40] sm:$0xff]  }
  0x74   : > { %2047 = vmatprep.subr.bf16.mxu1 %v2815_v9  ;;  %v2863_v25 = vld [vmem:[#allocation5 + $0xc8] sm:$0xff]   ;;  %v2875_v29 = vld [vmem:[#allocation5 + $0xc0] sm:$0xff]   ;;  %v400_v34 = vld [vmem:[%s2770_s9 + $0x18] sm:$0xff] }
  0x75   : > { %v2866_v26 = vld [vmem:[#allocation5 + $0x8] sm:$0xff]   ;;  %v2878_v30 = vld [vmem:[#allocation5] sm:$0xff]   ;;  %v404_v36 = vld [vmem:[%s2770_s9 + $0x38] sm:$0xff] }
  0x76   : > { %1984 = vmatpush3.bf16.msra.mxu0 %v2818_v10  ;;  %v2869_v27 = vld [vmem:[#allocation5 + $0x88] sm:$0xff]   ;;  %v2881_v31 = vld [vmem:[#allocation5 + $0x80] sm:$0xff]   ;;  %v464_v39 = vpack.c.bf16 %v404_v36, %v400_v34  ;;  %v399_v41 = vld [vmem:[%s2770_s9 + $0x10] sm:$0xff] }
  0x77   : > { %2048 = vmatpush3.bf16.msra.mxu1 %v2821_v11  ;;  %1985 = vmatprep.subr.bf16.mxu0 %v2824_v12  ;;  %v398_v32 = vld [vmem:[%s2770_s9 + $0x8] sm:$0xff]  ;;  %v397_v37 = vld [vmem:[%s2770_s9] sm:$0xff]  ;;  %v403_v42 = vld [vmem:[%s2770_s9 + $0x30] sm:$0xff] }
  0x78   : > { %2049 = vmatprep.subr.bf16.mxu1 %v2827_v13  ;;  %v402_v33 = vld [vmem:[%s2770_s9 + $0x28] sm:$0xff]  ;;  %v401_v38 = vld [vmem:[%s2770_s9 + $0x20] sm:$0xff]  ;;  %v463_v44 = vpack.c.bf16 %v403_v42, %v399_v41  ;;  %v408_v46 = vld [vmem:[%s2770_s9 + $0x58] sm:$0xff]  ;;  %820 = vmatprep.mubr.bf16.mxu1 %v464_v39 }
  0x79   : > { %v462_v35 = vpack.c.bf16 %v402_v33, %v398_v32  ;;  %v461_v40 = vpack.c.bf16 %v401_v38, %v397_v37  ;;  %v406_v43 = vld [vmem:[%s2770_s9 + $0x48] sm:$0xff]  ;;  %v412_v47 = vld [vmem:[%s2770_s9 + $0x78] sm:$0xff]  ;;  %v405_v50 = vld [vmem:[%s2770_s9 + $0x40] sm:$0xff] }
  0x7a   : > { %1986 = vmatpush3.bf16.msra.mxu0 %v2830_v14  ;;  %v410_v45 = vld [vmem:[%s2770_s9 + $0x68] sm:$0xff]  ;;  %v468_v49 = vpack.c.bf16 %v412_v47, %v408_v46  ;;  %v409_v51 = vld [vmem:[%s2770_s9 + $0x60] sm:$0xff]  ;;  %v407_v52 = vld [vmem:[%s2770_s9 + $0x50] sm:$0xff] }
  0x7b   : > { %2050 = vmatpush3.bf16.msra.mxu1 %v2833_v15  ;;  %1987 = vmatprep.subr.bf16.mxu0 %v2836_v16  ;;  %v466_v48 = vpack.c.bf16 %v410_v45, %v406_v43  ;;  %v411_v53 = vld [vmem:[%s2770_s9 + $0x70] sm:$0xff]  ;;  %v414_v54 = vld [vmem:[%s2770_s9 + $0x88] sm:$0xff]  ;;  %v416_v56 = vld [vmem:[%s2770_s9 + $0x98] sm:$0xff]  ;;  %v465_v58 = vpack.c.bf16 %v409_v51, %v405_v50 }
  0x7c   : > { %2051 = vmatprep.subr.bf16.mxu1 %v2839_v17  ;;  %723 = vmatprep.mubr.bf16.mxu0 %v462_v35  ;;  %v418_v55 = vld [vmem:[%s2770_s9 + $0xa8] sm:$0xff]  ;;  %v420_v57 = vld [vmem:[%s2770_s9 + $0xb8] sm:$0xff]  ;;  %v467_v59 = vpack.c.bf16 %v411_v53, %v407_v52  ;;  %v413_v62 = vld [vmem:[%s2770_s9 + $0x80] sm:$0xff] }
  0x7d   : > { %v470_v60 = vpack.c.bf16 %v418_v55, %v414_v54  ;;  %v472_v61 = vpack.c.bf16 %v420_v57, %v416_v56  ;;  %v417_v63 = vld [vmem:[%s2770_s9 + $0xa0] sm:$0xff]  ;;  %v430_v32 = vld [vmem:[%s2770_s9 + $0x108] sm:$0xff]  ;;  %v436_v34 = vld [vmem:[%s2770_s9 + $0x138] sm:$0xff] }
  0x7e   : > { %1988 = vmatpush3.bf16.msra.mxu0 %v2842_v18  ;;  %v434_v33 = vld [vmem:[%s2770_s9 + $0x128] sm:$0xff]  ;;  %v448_v42 = vld [vmem:[%s2770_s9 + $0x198] sm:$0xff]  ;;  %v445_v46 = vld [vmem:[%s2770_s9 + $0x180] sm:$0xff] }
  0x7f   : > { %2052 = vmatpush3.bf16.msra.mxu1 %v2845_v19  ;;  %1989 = vmatprep.subr.bf16.mxu0 %v2848_v20  ;;  %v438_v36 = vld [vmem:[%s2770_s9 + $0x148] sm:$0xff]  ;;  %v449_v47 = vld [vmem:[%s2770_s9 + $0x1a0] sm:$0xff]  ;;  %v456_v52 = vld [vmem:[%s2770_s9 + $0x1d8] sm:$0xff] }
  0x80   : > { %2053 = vmatprep.subr.bf16.mxu1 %v2851_v21  ;;  %v442_v37 = vld [vmem:[%s2770_s9 + $0x168] sm:$0xff]  ;;  %v460_v53 = vld [vmem:[%s2770_s9 + $0x1f8] sm:$0xff]  ;;  %v485_v54 = vpack.c.bf16 %v449_v47, %v445_v46 }
  0x81   : > { %v482_v38 = vpack.c.bf16 %v442_v37, %v438_v36  ;;  %v450_v41 = vld [vmem:[%s2770_s9 + $0x1a8] sm:$0xff]  ;;  %v492_v57 = vpack.c.bf16 %v460_v53, %v456_v52 }
  0x82   : > { %1990 = vmatpush3.bf16.msra.mxu0 %v2854_v22  ;;  %v454_v50 = vld [vmem:[%s2770_s9 + $0x1c8] sm:$0xff] }
  0x83   : > { %2054 = vmatpush3.bf16.msra.mxu1 %v2857_v23  ;;  %1991 = vmatprep.subr.bf16.mxu0 %v2860_v24  ;;  %v458_v51 = vld [vmem:[%s2770_s9 + $0x1e8] sm:$0xff] }
  0x84   : > { %2055 = vmatprep.subr.bf16.mxu1 %v2863_v25  ;;  %v490_v56 = vpack.c.bf16 %v458_v51, %v454_v50  ;;  %v1907_v46 = vld [vmem:[%s2770_s9 + $0x308] sm:$0xff] }
  0x85   : > { %v1911_v47 = vld [vmem:[%s2770_s9 + $0x328] sm:$0xff] }
  0x86   : > { %1992 = vmatpush3.bf16.msra.mxu0 %v2866_v26  ;;  %v1238_v52 = vpack.c.bf16 %v1911_v47, %v1907_v46 }
  0x87   : > { %2056 = vmatpush3.bf16.msra.mxu1 %v2869_v27  ;;  %1993 = vmatprep.subr.bf16.mxu0 %v2872_v28 }
  0x88   : > { %2057 = vmatprep.subr.bf16.mxu1 %v2875_v29 }
  0x8a   : > { %1994 = vmatpush3.bf16.msra.mxu0 %v2878_v30 }
  0x8b   : > { %2058 = vmatpush3.bf16.msra.mxu1 %v2881_v31  ;;  %2107 = vmatprep.subr.bf16.mxu0 %v2789_v0  ;;  %v415_v0 = vld [vmem:[%s2770_s9 + $0x90] sm:$0xff] }
  0x8c   : > { %2171 = vmatprep.subr.bf16.mxu1 %v2791_v1  ;;  %v419_v1 = vld [vmem:[%s2770_s9 + $0xb0] sm:$0xff] }
  0x8d   : > { %724 = vmatmul.mubr.bf16.vlgmr.msra.gmra.mxu0 %v461_v40  ;;  %v446_v40 = vld [vmem:[%s2770_s9 + $0x188] sm:$0xff] }
  0x8e   : > { %821 = vmatmul.mubr.bf16.vlgmr.msra.gmra.mxu1 %v463_v44  ;;  %2108 = vmatpush3.bf16.msra.mxu0 %v2794_v2  ;;  %v422_v2 = vld [vmem:[%s2770_s9 + $0xc8] sm:$0xff]  ;;  %v486_v44 = vpack.c.bf16 %v450_v41, %v446_v40 }
  0x8f   : > { %2172 = vmatpush3.bf16.msra.mxu1 %v2797_v3  ;;  %731 = vmatprep.mubr.bf16.mxu0 %v466_v48  ;;  %v426_v3 = vld [vmem:[%s2770_s9 + $0xe8] sm:$0xff]  ;;  %v447_v48 = vld [vmem:[%s2770_s9 + $0x190] sm:$0xff] }
  0x90   : > { %828 = vmatprep.mubr.bf16.mxu1 %v468_v49  ;;  %2109 = vmatprep.subr.bf16.mxu0 %v2800_v4  ;;  %v424_v4 = vld [vmem:[%s2770_s9 + $0xd8] sm:$0xff]  ;;  %v451_v49 = vld [vmem:[%s2770_s9 + $0x1b0] sm:$0xff] }
  0x91   : > { %2173 = vmatprep.subr.bf16.mxu1 %v2803_v5  ;;  %v428_v5 = vld [vmem:[%s2770_s9 + $0xf8] sm:$0xff]  ;;  %v487_v55 = vpack.c.bf16 %v451_v49, %v447_v48 }
  0x92   : > { %2110 = vmatpush3.bf16.msra.mxu0 %v2806_v6  ;;  %v469_v6 = vpack.c.bf16 %v417_v63, %v413_v62  ;;  %v1875_v62 = vld [vmem:[%s2770_s9 + $0x208] sm:$0xff]  ;;  %v1909_v48 = vld [vmem:[%s2770_s9 + $0x318] sm:$0xff] }
  0x93   : > { %2174 = vmatpush3.bf16.msra.mxu1 %v2809_v7  ;;  %2111 = vmatprep.subr.bf16.mxu0 %v2812_v8  ;;  %v471_v7 = vpack.c.bf16 %v419_v1, %v415_v0  ;;  %v474_v8 = vpack.c.bf16 %v426_v3, %v422_v2  ;;  %v1879_v63 = vld [vmem:[%s2770_s9 + $0x228] sm:$0xff]  ;;  %v1877_v0 = vld [vmem:[%s2770_s9 + $0x218] sm:$0xff] }
  0x94   : > { %2175 = vmatprep.subr.bf16.mxu1 %v2815_v9  ;;  %v476_v9 = vpack.c.bf16 %v428_v5, %v424_v4  ;;  %v1881_v1 = vld [vmem:[%s2770_s9 + $0x238] sm:$0xff]  ;;  %v1222_v4 = vpack.c.bf16 %v1879_v63, %v1875_v62 }
  0x95   : > { %732 = vmatmul.mubr.bf16.gmra.mxu0 %v465_v58  ;;  %v453_v58 = vld [vmem:[%s2770_s9 + $0x1c0] sm:$0xff]  ;;  %v1224_v5 = vpack.c.bf16 %v1881_v1, %v1877_v0  ;;  %v1913_v49 = vld [vmem:[%s2770_s9 + $0x338] sm:$0xff] }
  0x96   : > { %829 = vmatmul.mubr.bf16.gmra.mxu1 %v467_v59  ;;  %739 = vmatprep.mubr.bf16.mxu0 %v470_v60  ;;  %v457_v59 = vld [vmem:[%s2770_s9 + $0x1e0] sm:$0xff]  ;;  %v455_v60 = vld [vmem:[%s2770_s9 + $0x1d0] sm:$0xff]  ;;  %v1240_v53 = vpack.c.bf16 %v1913_v49, %v1909_v48 }
  0x97   : > { %836 = vmatprep.mubr.bf16.mxu1 %v472_v61  ;;  %2112 = vmatpush3.bf16.msra.mxu0 %v2818_v10  ;;  %v421_v10 = vld [vmem:[%s2770_s9 + $0xc0] sm:$0xff]  ;;  %v459_v61 = vld [vmem:[%s2770_s9 + $0x1f0] sm:$0xff]  ;;  %v489_v2 = vpack.c.bf16 %v457_v59, %v453_v58  ;;  %v1915_v58 = vld [vmem:[%s2770_s9 + $0x348] sm:$0xff] }
  0x98   : > { %2176 = vmatpush3.bf16.msra.mxu1 %v2821_v11  ;;  %2113 = vmatprep.subr.bf16.mxu0 %v2824_v12  ;;  %v425_v11 = vld [vmem:[%s2770_s9 + $0xe0] sm:$0xff]  ;;  %v423_v12 = vld [vmem:[%s2770_s9 + $0xd0] sm:$0xff]  ;;  %v491_v3 = vpack.c.bf16 %v459_v61, %v455_v60  ;;  %v1919_v59 = vld [vmem:[%s2770_s9 + $0x368] sm:$0xff] }
  0x99   : > { %2177 = vmatprep.subr.bf16.mxu1 %v2827_v13  ;;  %v427_v13 = vld [vmem:[%s2770_s9 + $0xf0] sm:$0xff]  ;;  %v1917_v60 = vld [vmem:[%s2770_s9 + $0x358] sm:$0xff]  ;;  %v1242_v0 = vpack.c.bf16 %v1919_v59, %v1915_v58 }
  0x9a   : > { %v1921_v61 = vld [vmem:[%s2770_s9 + $0x378] sm:$0xff] }
  0x9b   : > { %2114 = vmatpush3.bf16.msra.mxu0 %v2830_v14  ;;  %v432_v14 = vld [vmem:[%s2770_s9 + $0x118] sm:$0xff]  ;;  %v1244_v1 = vpack.c.bf16 %v1921_v61, %v1917_v60 }
  0x9c   : > { %2178 = vmatpush3.bf16.msra.mxu1 %v2833_v15  ;;  %2115 = vmatprep.subr.bf16.mxu0 %v2836_v16  ;;  %v473_v15 = vpack.c.bf16 %v425_v11, %v421_v10  ;;  %v475_v16 = vpack.c.bf16 %v427_v13, %v423_v12  ;;  %v480_v35 = vpack.c.bf16 %v436_v34, %v432_v14  ;;  %v1883_v10 = vld [vmem:[%s2770_s9 + $0x248] sm:$0xff]  ;;  %v1885_v12 = vld [vmem:[%s2770_s9 + $0x258] sm:$0xff] }
  0x9d   : > { %740 = vmatmul.mubr.bf16.gmra.mxu0 %v469_v6  ;;  %2179 = vmatprep.subr.bf16.mxu1 %v2839_v17  ;;  %v478_v17 = vpack.c.bf16 %v434_v33, %v430_v32  ;;  %v1874_v6 = vld [vmem:[%s2770_s9 + $0x200] sm:$0xff]  ;;  %v1887_v11 = vld [vmem:[%s2770_s9 + $0x268] sm:$0xff]  ;;  %v1889_v13 = vld [vmem:[%s2770_s9 + $0x278] sm:$0xff] }
  0x9e   : > { %837 = vmatmul.mubr.bf16.gmra.mxu1 %v471_v7  ;;  %747 = vmatprep.mubr.bf16.mxu0 %v474_v8  ;;  %v1878_v7 = vld [vmem:[%s2770_s9 + $0x220] sm:$0xff]  ;;  %v1876_v8 = vld [vmem:[%s2770_s9 + $0x210] sm:$0xff]  ;;  %v1226_v14 = vpack.c.bf16 %v1887_v11, %v1883_v10  ;;  %v1228_v34 = vpack.c.bf16 %v1889_v13, %v1885_v12 }
  0x9f   : > { %844 = vmatprep.mubr.bf16.mxu1 %v476_v9  ;;  %2116 = vmatpush3.bf16.msra.mxu0 %v2842_v18  ;;  %v429_v18 = vld [vmem:[%s2770_s9 + $0x100] sm:$0xff]  ;;  %v1880_v9 = vld [vmem:[%s2770_s9 + $0x230] sm:$0xff]  ;;  %v1221_v32 = vpack.c.bf16 %v1878_v7, %v1874_v6  ;;  %v1923_v6 = vld [vmem:[%s2770_s9 + $0x388] sm:$0xff] }
  0xa0   : > { %2180 = vmatpush3.bf16.msra.mxu1 %v2845_v19  ;;  %2117 = vmatprep.subr.bf16.mxu0 %v2848_v20  ;;  %v433_v19 = vld [vmem:[%s2770_s9 + $0x120] sm:$0xff]  ;;  %v431_v20 = vld [vmem:[%s2770_s9 + $0x110] sm:$0xff]  ;;  %v1223_v33 = vpack.c.bf16 %v1880_v9, %v1876_v8  ;;  %v1927_v7 = vld [vmem:[%s2770_s9 + $0x3a8] sm:$0xff] }
  0xa1   : > { %2181 = vmatprep.subr.bf16.mxu1 %v2851_v21  ;;  %v435_v21 = vld [vmem:[%s2770_s9 + $0x130] sm:$0xff]  ;;  %v1925_v8 = vld [vmem:[%s2770_s9 + $0x398] sm:$0xff]  ;;  %v1246_v12 = vpack.c.bf16 %v1927_v7, %v1923_v6 }
  0xa2   : > { %v1929_v9 = vld [vmem:[%s2770_s9 + $0x3b8] sm:$0xff] }
  0xa3   : > { %2118 = vmatpush3.bf16.msra.mxu0 %v2854_v22  ;;  %v440_v22 = vld [vmem:[%s2770_s9 + $0x158] sm:$0xff]  ;;  %v1248_v13 = vpack.c.bf16 %v1929_v9, %v1925_v8 }
  0xa4   : > { %2182 = vmatpush3.bf16.msra.mxu1 %v2857_v23  ;;  %2119 = vmatprep.subr.bf16.mxu0 %v2860_v24  ;;  %v444_v23 = vld [vmem:[%s2770_s9 + $0x178] sm:$0xff]  ;;  %v477_v24 = vpack.c.bf16 %v433_v19, %v429_v18  ;;  %v1891_v18 = vld [vmem:[%s2770_s9 + $0x288] sm:$0xff] }
  0xa5   : > { %748 = vmatmul.mubr.bf16.gmra.mxu0 %v473_v15  ;;  %2183 = vmatprep.subr.bf16.mxu1 %v2863_v25  ;;  %v479_v25 = vpack.c.bf16 %v435_v21, %v431_v20  ;;  %v484_v39 = vpack.c.bf16 %v444_v23, %v440_v22  ;;  %v1882_v15 = vld [vmem:[%s2770_s9 + $0x240] sm:$0xff]  ;;  %v1895_v19 = vld [vmem:[%s2770_s9 + $0x2a8] sm:$0xff]  ;;  %v1893_v20 = vld [vmem:[%s2770_s9 + $0x298] sm:$0xff] }
  0xa6   : > { %845 = vmatmul.mubr.bf16.gmra.mxu1 %v475_v16  ;;  %755 = vmatprep.mubr.bf16.mxu0 %v478_v17  ;;  %v1886_v16 = vld [vmem:[%s2770_s9 + $0x260] sm:$0xff]  ;;  %v1884_v17 = vld [vmem:[%s2770_s9 + $0x250] sm:$0xff]  ;;  %v1897_v21 = vld [vmem:[%s2770_s9 + $0x2b8] sm:$0xff]  ;;  %v1230_v22 = vpack.c.bf16 %v1895_v19, %v1891_v18 }
  0xa7   : > { %852 = vmatprep.mubr.bf16.mxu1 %v480_v35  ;;  %2120 = vmatpush3.bf16.msra.mxu0 %v2866_v26  ;;  %v437_v26 = vld [vmem:[%s2770_s9 + $0x140] sm:$0xff]  ;;  %v1888_v35 = vld [vmem:[%s2770_s9 + $0x270] sm:$0xff]  ;;  %v1225_v36 = vpack.c.bf16 %v1886_v16, %v1882_v15  ;;  %v1232_v23 = vpack.c.bf16 %v1897_v21, %v1893_v20  ;;  %v1931_v15 = vld [vmem:[%s2770_s9 + $0x3c8] sm:$0xff] }
  0xa8   : > { %2184 = vmatpush3.bf16.msra.mxu1 %v2869_v27  ;;  %2121 = vmatprep.subr.bf16.mxu0 %v2872_v28  ;;  %v441_v27 = vld [vmem:[%s2770_s9 + $0x160] sm:$0xff]  ;;  %v439_v28 = vld [vmem:[%s2770_s9 + $0x150] sm:$0xff]  ;;  %v1227_v37 = vpack.c.bf16 %v1888_v35, %v1884_v17  ;;  %v1935_v16 = vld [vmem:[%s2770_s9 + $0x3e8] sm:$0xff] }
  0xa9   : > { %2185 = vmatprep.subr.bf16.mxu1 %v2875_v29  ;;  %v443_v29 = vld [vmem:[%s2770_s9 + $0x170] sm:$0xff]  ;;  %v1933_v17 = vld [vmem:[%s2770_s9 + $0x3d8] sm:$0xff]  ;;  %v1250_v20 = vpack.c.bf16 %v1935_v16, %v1931_v15  ;;  %v889_v16 = vld [vmem:[%s2783_s15 + $0x20] sm:$0xff] }
  0xaa   : > { %v483_v43 = vpack.c.bf16 %v443_v29, %v439_v28  ;;  %v1901_v28 = vld [vmem:[%s2770_s9 + $0x2d8] sm:$0xff] }
  0xab   : > { %2122 = vmatpush3.bf16.msra.mxu0 %v2878_v30  ;;  %v452_v30 = vld [vmem:[%s2770_s9 + $0x1b8] sm:$0xff] }
  0xac   : > { %2186 = vmatpush3.bf16.msra.mxu1 %v2881_v31  ;;  %v481_v31 = vpack.c.bf16 %v441_v27, %v437_v26  ;;  %v488_v45 = vpack.c.bf16 %v452_v30, %v448_v42  ;;  %v1899_v26 = vld [vmem:[%s2770_s9 + $0x2c8] sm:$0xff]  ;;  %v1905_v29 = vld [vmem:[%s2770_s9 + $0x2f8] sm:$0xff] }
  0xad   : > { %756 = vmatmul.mubr.bf16.gmra.mxu0 %v477_v24  ;;  %v1890_v24 = vld [vmem:[%s2770_s9 + $0x280] sm:$0xff]  ;;  %v1903_v27 = vld [vmem:[%s2770_s9 + $0x2e8] sm:$0xff]  ;;  %v1236_v30 = vpack.c.bf16 %v1905_v29, %v1901_v28  ;;  %v1937_v35 = vld [vmem:[%s2770_s9 + $0x3f8] sm:$0xff] }
  0xae   : > { %853 = vmatmul.mubr.bf16.gmra.mxu1 %v479_v25  ;;  %763 = vmatprep.mubr.bf16.mxu0 %v482_v38  ;;  %v1894_v25 = vld [vmem:[%s2770_s9 + $0x2a0] sm:$0xff]  ;;  %v1892_v38 = vld [vmem:[%s2770_s9 + $0x290] sm:$0xff]  ;;  %v1234_v42 = vpack.c.bf16 %v1903_v27, %v1899_v26  ;;  %v1252_v21 = vpack.c.bf16 %v1937_v35, %v1933_v17  ;;  %v888_v9 = vld [vmem:[%s2783_s15 + $0x18] sm:$0xff] }
  0xaf   : > { %860 = vmatprep.mubr.bf16.mxu1 %v484_v39  ;;  %v1896_v39 = vld [vmem:[%s2770_s9 + $0x2b0] sm:$0xff]  ;;  %v1229_v40 = vpack.c.bf16 %v1894_v25, %v1890_v24  ;;  %v3048_v26 = vld [vmem:[%s3564_s2] ss:$0 sm:$0xff] }
  0xb0   : > { %v1231_v41 = vpack.c.bf16 %v1896_v39, %v1892_v38 }
  0xb5   : > { %764 = vmatmul.mubr.bf16.gmra.mxu0 %v481_v31  ;;  %v1898_v31 = vld [vmem:[%s2770_s9 + $0x2c0] sm:$0xff] }
  0xb6   : > { %861 = vmatmul.mubr.bf16.gmra.mxu1 %v483_v43  ;;  %771 = vmatprep.mubr.bf16.mxu0 %v486_v44  ;;  %v1902_v43 = vld [vmem:[%s2770_s9 + $0x2e0] sm:$0xff]  ;;  %v1900_v44 = vld [vmem:[%s2770_s9 + $0x2d0] sm:$0xff] }
  0xb7   : > { %868 = vmatprep.mubr.bf16.mxu1 %v488_v45  ;;  %v1904_v45 = vld [vmem:[%s2770_s9 + $0x2f0] sm:$0xff]  ;;  %v1233_v50 = vpack.c.bf16 %v1902_v43, %v1898_v31  ;;  %v885_v43 = vld [vmem:[%s2783_s15] sm:$0xff] }
  0xb8   : > { %v1235_v51 = vpack.c.bf16 %v1904_v45, %v1900_v44 }
  0xbd   : > { %772 = vmatmul.mubr.bf16.gmra.mxu0 %v485_v54  ;;  %v1906_v54 = vld [vmem:[%s2770_s9 + $0x300] sm:$0xff] }
  0xbe   : > { %869 = vmatmul.mubr.bf16.gmra.mxu1 %v487_v55  ;;  %779 = vmatprep.mubr.bf16.mxu0 %v490_v56  ;;  %v1910_v55 = vld [vmem:[%s2770_s9 + $0x320] sm:$0xff]  ;;  %v1908_v56 = vld [vmem:[%s2770_s9 + $0x310] sm:$0xff] }
  0xbf   : > { %876 = vmatprep.mubr.bf16.mxu1 %v492_v57  ;;  %v1912_v57 = vld [vmem:[%s2770_s9 + $0x330] sm:$0xff]  ;;  %v1237_v62 = vpack.c.bf16 %v1910_v55, %v1906_v54 }
  0xc0   : > { %v1239_v63 = vpack.c.bf16 %v1912_v57, %v1908_v56 }
  0xc5   : > { %780 = vmatmul.mubr.bf16.gmra.mxu0 %v489_v2  ;;  %v1914_v2 = vld [vmem:[%s2770_s9 + $0x340] sm:$0xff] }
  0xc6   : > { %877 = vmatmul.mubr.bf16.gmra.mxu1 %v491_v3  ;;  %1285 = vmatprep.mubr.bf16.mxu0 %v1222_v4  ;;  %v1918_v3 = vld [vmem:[%s2770_s9 + $0x360] sm:$0xff]  ;;  %v1916_v4 = vld [vmem:[%s2770_s9 + $0x350] sm:$0xff] }
  0xc7   : > { %1382 = vmatprep.mubr.bf16.mxu1 %v1224_v5  ;;  %v1920_v5 = vld [vmem:[%s2770_s9 + $0x370] sm:$0xff]  ;;  %v1241_v10 = vpack.c.bf16 %v1918_v3, %v1914_v2 }
  0xc8   : > { %v1243_v11 = vpack.c.bf16 %v1920_v5, %v1916_v4 }
  0xcd   : > { %1286 = vmatmul.mubr.bf16.vlgmr.msra.gmra.mxu0 %v1221_v32  ;;  %v1922_v32 = vld [vmem:[%s2770_s9 + $0x380] sm:$0xff] }
  0xce   : > { %1383 = vmatmul.mubr.bf16.vlgmr.msra.gmra.mxu1 %v1223_v33  ;;  %1293 = vmatprep.mubr.bf16.mxu0 %v1226_v14  ;;  %v1926_v33 = vld [vmem:[%s2770_s9 + $0x3a0] sm:$0xff]  ;;  %v1924_v14 = vld [vmem:[%s2770_s9 + $0x390] sm:$0xff] }
  0xcf   : > { %1390 = vmatprep.mubr.bf16.mxu1 %v1228_v34  ;;  %v1928_v34 = vld [vmem:[%s2770_s9 + $0x3b0] sm:$0xff]  ;;  %v1245_v18 = vpack.c.bf16 %v1926_v33, %v1922_v32 }
  0xd0   : > { %v1247_v19 = vpack.c.bf16 %v1928_v34, %v1924_v14 }
  0xd5   : > { %1294 = vmatmul.mubr.bf16.gmra.mxu0 %v1225_v36  ;;  %v1930_v36 = vld [vmem:[%s2770_s9 + $0x3c0] sm:$0xff] }
  0xd6   : > { %1391 = vmatmul.mubr.bf16.gmra.mxu1 %v1227_v37  ;;  %1301 = vmatprep.mubr.bf16.mxu0 %v1230_v22  ;;  %v1934_v37 = vld [vmem:[%s2770_s9 + $0x3e0] sm:$0xff]  ;;  %v1932_v22 = vld [vmem:[%s2770_s9 + $0x3d0] sm:$0xff] }
  0xd7   : > { %1398 = vmatprep.mubr.bf16.mxu1 %v1232_v23  ;;  %v1936_v23 = vld [vmem:[%s2770_s9 + $0x3f0] sm:$0xff]  ;;  %v1249_v24 = vpack.c.bf16 %v1934_v37, %v1930_v36  ;;  %s2487_s9 = sshll.u32 %s2566_s18, 4  ;;  %s2488_s9 = int_to_ptr.vmem [resolvable:$false] %s2487_s9 }
  0xd8   : > { %v1251_v25 = vpack.c.bf16 %v1936_v23, %v1932_v22  ;;  %v890_v23 = vld [vmem:[%s2783_s15 + $0x28] sm:$0xff]  ;;  %s2489_s14 = scalar_lea.vmem %s2488_s9, 8192  ;;  %p2490_p1 = scmp.lt.s32.totalorder %s3517_s19, %s2488_s9 }
  0xd9   : > { %p2491_p0 = scmp.lt.s32.totalorder %s2489_s14, %s2483_s8 }
  0xdb   : > { %p2492_p7 = por %p2491_p0, %p2490_p1 }
  0xdd   : > { %1302 = vmatmul.mubr.bf16.gmra.mxu0 %v1229_v40  ;;  %p2493_p11 = pnand %p2492_p7, %p2486_p13 }
  0xde   : > { %1399 = vmatmul.mubr.bf16.gmra.mxu1 %v1231_v41  ;;  %1309 = vmatprep.mubr.bf16.mxu0 %v1234_v42 }
  0xdf   : > { %1406 = vmatprep.mubr.bf16.mxu1 %v1236_v30 }
  0xe5   : > { %1310 = vmatmul.mubr.bf16.gmra.mxu0 %v1233_v50 }
  0xe6   : > { %1407 = vmatmul.mubr.bf16.gmra.mxu1 %v1235_v51  ;;  %1317 = vmatprep.mubr.bf16.mxu0 %v1238_v52 }
  0xe7   : > { %1414 = vmatprep.mubr.bf16.mxu1 %v1240_v53  ;;  %v886_v53 = vld [vmem:[%s2783_s15 + $0x8] sm:$0xff] }
  0xed   : > { %1318 = vmatmul.mubr.bf16.gmra.mxu0 %v1237_v62 }
  0xee   : > { %1415 = vmatmul.mubr.bf16.gmra.mxu1 %v1239_v63  ;;  %1325 = vmatprep.mubr.bf16.mxu0 %v1242_v0  ;;  %v887_v63 = vld [vmem:[%s2783_s15 + $0x10] sm:$0xff] }
  0xef   : > { %1422 = vmatprep.mubr.bf16.mxu1 %v1244_v1 }
  0xf5   : > { %1326 = vmatmul.mubr.bf16.gmra.mxu0 %v1241_v10 }
  0xf6   : > { %1423 = vmatmul.mubr.bf16.gmra.mxu1 %v1243_v11  ;;  %1333 = vmatprep.mubr.bf16.mxu0 %v1246_v12 }
  0xf7   : > { %1430 = vmatprep.mubr.bf16.mxu1 %v1248_v13 }
  0xfd   : > { %1334 = vmatmul.mubr.bf16.gmra.mxu0 %v1245_v18 }
  0xfe   : > { %1431 = vmatmul.mubr.bf16.gmra.mxu1 %v1247_v19  ;;  %1341 = vmatprep.mubr.bf16.mxu0 %v1250_v20 }
  0xff   : > { %1438 = vmatprep.mubr.bf16.mxu1 %v1252_v21 }
 0x105   : > { %1342 = vmatmul.mubr.bf16.gmra.mxu0 %v1249_v24 }
 0x106   : > { %1439 = vmatmul.mubr.bf16.gmra.mxu1 %v1251_v25 }
 0x14d   : > { %v1995_v38 = vpop.f32.mrf.mxu0 }
 0x14e   : > { %v2059_v39 = vpop.f32.mrf.mxu1 }
 0x14f   : > { %v1996_v27 = vpop.f32.mrf.mxu0 }
 0x150   : > { %v1997_v28 = vadd.f32 %v1996_v27, %v1995_v38  ;;  %v2060_v29 = vpop.f32.mrf.mxu1 }
 0x151   : > { %v1998_v40 = vpop.f32.mrf.mxu0  ;;  %v2061_v42 = vadd.f32 %v2060_v29, %v2059_v39 }
 0x152   : > { %v726_v41 = vadd.f32 %v1997_v28, %v3048_v26  ;;  %v2062_v30 = vpop.f32.mrf.mxu1 }
 0x153   : > { %v1999_v31 = vpop.f32.mrf.mxu0 }
 0x154   : > { %v823_v44 = vadd.f32 %v2061_v42, %v726_v41  ;;  %v2000_v45 = vadd.f32 %v1999_v31, %v1998_v40  ;;  %v2063_v46 = vpop.f32.mrf.mxu1  ;;  %v891_v42 = vld [vmem:[%s2783_s15 + $0x30] sm:$0xff] }
 0x155   : > { %v2001_v47 = vpop.f32.mrf.mxu0  ;;  %v2064_v49 = vadd.f32 %v2063_v46, %v2062_v30 }
 0x156   : > { %v729_v48 = vadd.f32 %v2000_v45, %v3048_v26  ;;  %v2065_v50 = vpop.f32.mrf.mxu1  ;;  %v3053_v51 = vadd.f32 %v885_v43, %v823_v44 }
 0x157   : > { %v2002_v52 = vpop.f32.mrf.mxu0 }
 0x158   : > { %v826_v54 = vadd.f32 %v2064_v49, %v729_v48  ;;  %v2003_v55 = vadd.f32 %v2002_v52, %v2001_v47  ;;  %v2066_v56 = vpop.f32.mrf.mxu1  ;;  %917 = vadd.xlane.f32.xlu0 %v3053_v51 }
 0x159   : > { %v2004_v57 = vpop.f32.mrf.mxu0  ;;  %v2067_v59 = vadd.f32 %v2066_v56, %v2065_v50  ;;  %v892_v50 = vld [vmem:[%s2783_s15 + $0x38] sm:$0xff] }
 0x15a   : > { %v734_v58 = vadd.f32 %v2003_v55, %v3048_v26  ;;  %v2068_v60 = vpop.f32.mrf.mxu1  ;;  %v3058_v61 = vadd.f32 %v886_v53, %v826_v54 }
 0x15b   : > { %v2005_v62 = vpop.f32.mrf.mxu0 }
 0x15c   : > { %v831_v0 = vadd.f32 %v2067_v59, %v734_v58  ;;  %v2006_v1 = vadd.f32 %v2005_v62, %v2004_v57  ;;  %v2069_v2 = vpop.f32.mrf.mxu1  ;;  %919 = vadd.xlane.f32.xlu0 %v3058_v61  ;;  %v893_v62 = vld [vmem:[%s2783_s15 + $0x40] sm:$0xff] }
 0x15d   : > { %v2007_v3 = vpop.f32.mrf.mxu0  ;;  %v2070_v5 = vadd.f32 %v2069_v2, %v2068_v60 }
 0x15e   : > { %v737_v4 = vadd.f32 %v2006_v1, %v3048_v26  ;;  %v2071_v6 = vpop.f32.mrf.mxu1  ;;  %v3063_v7 = vadd.f32 %v887_v63, %v831_v0 }
 0x15f   : > { %v2008_v8 = vpop.f32.mrf.mxu0 }
 0x160   : > { %v834_v10 = vadd.f32 %v2070_v5, %v737_v4  ;;  %v2009_v11 = vadd.f32 %v2008_v8, %v2007_v3  ;;  %v2072_v12 = vpop.f32.mrf.mxu1  ;;  %921 = vadd.xlane.f32.xlu1 %v3063_v7 }
 0x161   : > { %v2010_v13 = vpop.f32.mrf.mxu0  ;;  %v2073_v33 = vadd.f32 %v2072_v12, %v2071_v6 }
 0x162   : > { %v742_v32 = vadd.f32 %v2009_v11, %v3048_v26  ;;  %v2074_v14 = vpop.f32.mrf.mxu1  ;;  %v3068_v34 = vadd.f32 %v888_v9, %v834_v10  ;;  %v894_v9 = vld [vmem:[%s2783_s15 + $0x48] sm:$0xff] }
 0x163   : > { %v2011_v15 = vpop.f32.mrf.mxu0 }
 0x164   : > { %v839_v17 = vadd.f32 %v2073_v33, %v742_v32  ;;  %v2012_v35 = vadd.f32 %v2011_v15, %v2010_v13  ;;  %v2075_v18 = vpop.f32.mrf.mxu1  ;;  %923 = vadd.xlane.f32.xlu1 %v3068_v34 }
 0x165   : > { %v2013_v19 = vpop.f32.mrf.mxu0  ;;  %v2076_v21 = vadd.f32 %v2075_v18, %v2074_v14 }
 0x166   : > { %v745_v20 = vadd.f32 %v2012_v35, %v3048_v26  ;;  %v2077_v36 = vpop.f32.mrf.mxu1  ;;  %v3073_v37 = vadd.f32 %v889_v16, %v839_v17  ;;  %v895_v17 = vld [vmem:[%s2783_s15 + $0x50] sm:$0xff] }
 0x167   : > { %v2014_v22 = vpop.f32.mrf.mxu0 }
 0x168   : > { %v842_v24 = vadd.f32 %v2076_v21, %v745_v20  ;;  %v2015_v25 = vadd.f32 %v2014_v22, %v2013_v19  ;;  %v2078_v38 = vpop.f32.mrf.mxu1  ;;  %925 = vadd.xlane.f32.xlu0 %v3073_v37 }
 0x169   : > { %v2016_v39 = vpop.f32.mrf.mxu0  ;;  %v2079_v28 = vadd.f32 %v2078_v38, %v2077_v36 }
 0x16a   : > { %v750_v27 = vadd.f32 %v2015_v25, %v3048_v26  ;;  %v2080_v29 = vpop.f32.mrf.mxu1  ;;  %v3078_v40 = vadd.f32 %v890_v23, %v842_v24  ;;  %v896_v25 = vld [vmem:[%s2783_s15 + $0x58] sm:$0xff] }
 0x16b   : > { %v2017_v41 = vpop.f32.mrf.mxu0 }
 0x16c   : > { %v847_v30 = vadd.f32 %v2079_v28, %v750_v27  ;;  %v2018_v31 = vadd.f32 %v2017_v41, %v2016_v39  ;;  %v2081_v43 = vpop.f32.mrf.mxu1  ;;  %927 = vadd.xlane.f32.xlu1 %v3078_v40 }
 0x16d   : > { %v2019_v44 = vpop.f32.mrf.mxu0  ;;  %v2082_v46 = vadd.f32 %v2081_v43, %v2080_v29  ;;  %v897_v43 = vld [vmem:[%s2783_s15 + $0x60] sm:$0xff] }
 0x16e   : > { %v753_v45 = vadd.f32 %v2018_v31, %v3048_v26  ;;  %v2083_v47 = vpop.f32.mrf.mxu1  ;;  %v3083_v48 = vadd.f32 %v891_v42, %v847_v30 }
 0x16f   : > { %v2020_v49 = vpop.f32.mrf.mxu0 }
 0x170   : > { %v850_v52 = vadd.f32 %v2082_v46, %v753_v45  ;;  %v2021_v53 = vadd.f32 %v2020_v49, %v2019_v44  ;;  %v2084_v54 = vpop.f32.mrf.mxu1  ;;  %929 = vadd.xlane.f32.xlu0 %v3083_v48 }
 0x171   : > { %v2022_v55 = vpop.f32.mrf.mxu0  ;;  %v2085_v57 = vadd.f32 %v2084_v54, %v2083_v47 }
 0x172   : > { %v758_v56 = vadd.f32 %v2021_v53, %v3048_v26  ;;  %v2086_v58 = vpop.f32.mrf.mxu1  ;;  %v3088_v59 = vadd.f32 %v892_v50, %v850_v52 }
 0x173   : > { %v2023_v60 = vpop.f32.mrf.mxu0 }
 0x174   : > { %v855_v63 = vadd.f32 %v2085_v57, %v758_v56  ;;  %v2024_v0 = vadd.f32 %v2023_v60, %v2022_v55  ;;  %v2087_v1 = vpop.f32.mrf.mxu1  ;;  %931 = vadd.xlane.f32.xlu1 %v3088_v59  ;;  %v898_v55 = vld [vmem:[%s2783_s15 + $0x68] sm:$0xff] }
 0x175   : > { %v2025_v2 = vpop.f32.mrf.mxu0  ;;  %v2088_v4 = vadd.f32 %v2087_v1, %v2086_v58 }
 0x176   : > { %v761_v3 = vadd.f32 %v2024_v0, %v3048_v26  ;;  %v2089_v5 = vpop.f32.mrf.mxu1  ;;  %v3093_v6 = vadd.f32 %v893_v62, %v855_v63 }
 0x177   : > { %v2026_v8 = vpop.f32.mrf.mxu0 }
 0x178   : > { %v858_v10 = vadd.f32 %v2088_v4, %v761_v3  ;;  %v2027_v11 = vadd.f32 %v2026_v8, %v2025_v2  ;;  %v2090_v12 = vpop.f32.mrf.mxu1  ;;  %933 = vadd.xlane.f32.xlu0 %v3093_v6  ;;  %v899_v3 = vld [vmem:[%s2783_s15 + $0x70] sm:$0xff] }
 0x179   : > { %v2028_v13 = vpop.f32.mrf.mxu0  ;;  %v2091_v33 = vadd.f32 %v2090_v12, %v2089_v5 }
 0x17a   : > { %v766_v32 = vadd.f32 %v2027_v11, %v3048_v26  ;;  %v2092_v14 = vpop.f32.mrf.mxu1  ;;  %v3098_v15 = vadd.f32 %v894_v9, %v858_v10 }
 0x17b   : > { %v2029_v16 = vpop.f32.mrf.mxu0 }
 0x17c   : > { %v863_v35 = vadd.f32 %v2091_v33, %v766_v32  ;;  %v2030_v18 = vadd.f32 %v2029_v16, %v2028_v13  ;;  %v2093_v19 = vpop.f32.mrf.mxu1  ;;  %935 = vadd.xlane.f32.xlu1 %v3098_v15  ;;  %v900_v33 = vld [vmem:[%s2783_s15 + $0x78] sm:$0xff] }
 0x17d   : > { %v2031_v20 = vpop.f32.mrf.mxu0  ;;  %v2094_v36 = vadd.f32 %v2093_v19, %v2092_v14 }
 0x17e   : > { %v769_v21 = vadd.f32 %v2030_v18, %v3048_v26  ;;  %v2095_v22 = vpop.f32.mrf.mxu1  ;;  %v3103_v23 = vadd.f32 %v895_v17, %v863_v35 }
 0x17f   : > { %v2032_v24 = vpop.f32.mrf.mxu0 }
 0x180   : > { %v866_v38 = vadd.f32 %v2094_v36, %v769_v21  ;;  %v2033_v39 = vadd.f32 %v2032_v24, %v2031_v20  ;;  %v2096_v27 = vpop.f32.mrf.mxu1  ;;  %937 = vadd.xlane.f32.xlu0 %v3103_v23 }
 0x181   : > { %v2034_v28 = vpop.f32.mrf.mxu0  ;;  %v2097_v41 = vadd.f32 %v2096_v27, %v2095_v22  ;;  %v1938_v22 = vld [vmem:[%s2783_s15 + $0x80] sm:$0xff] }
 0x182   : > { %v774_v29 = vadd.f32 %v2033_v39, %v3048_v26  ;;  %v2098_v42 = vpop.f32.mrf.mxu1  ;;  %v3108_v30 = vadd.f32 %v896_v25, %v866_v38 }
 0x183   : > { %v2035_v31 = vpop.f32.mrf.mxu0 }
 0x184   : > { %v871_v44 = vadd.f32 %v2097_v41, %v774_v29  ;;  %v2036_v45 = vadd.f32 %v2035_v31, %v2034_v28  ;;  %v2099_v46 = vpop.f32.mrf.mxu1  ;;  %939 = vadd.xlane.f32.xlu1 %v3108_v30  ;;  %v1939_v31 = vld [vmem:[%s2783_s15 + $0x88] sm:$0xff] }
 0x185   : > { %v2037_v47 = vpop.f32.mrf.mxu0  ;;  %v2100_v50 = vadd.f32 %v2099_v46, %v2098_v42 }
 0x186   : > { %v777_v49 = vadd.f32 %v2036_v45, %v3048_v26  ;;  %v2101_v52 = vpop.f32.mrf.mxu1  ;;  %v3113_v53 = vadd.f32 %v897_v43, %v871_v44 }
 0x187   : > { %v2038_v54 = vpop.f32.mrf.mxu0 }
 0x188   : > { %v874_v56 = vadd.f32 %v2100_v50, %v777_v49  ;;  %v2039_v57 = vadd.f32 %v2038_v54, %v2037_v47  ;;  %v2102_v58 = vpop.f32.mrf.mxu1  ;;  %941 = vadd.xlane.f32.xlu0 %v3113_v53 }
 0x189   : > { %v2040_v60 = vpop.f32.mrf.mxu0  ;;  %v2103_v63 = vadd.f32 %v2102_v58, %v2101_v52 }
 0x18a   : > { %v782_v62 = vadd.f32 %v2039_v57, %v3048_v26  ;;  %v2104_v0 = vpop.f32.mrf.mxu1  ;;  %v3118_v1 = vadd.f32 %v898_v55, %v874_v56  ;;  %v1940_v55 = vld [vmem:[%s2783_s15 + $0x90] sm:$0xff] }
 0x18b   : > { %v2041_v2 = vpop.f32.mrf.mxu0 }
 0x18c   : > { %v879_v4 = vadd.f32 %v2103_v63, %v782_v62  ;;  %v2042_v5 = vadd.f32 %v2041_v2, %v2040_v60  ;;  %v2105_v8 = vpop.f32.mrf.mxu1  ;;  %943 = vadd.xlane.f32.xlu1 %v3118_v1 }
 0x18d   : > { %v2123_v9 = vpop.f32.mrf.mxu0  ;;  %v2106_v11 = vadd.f32 %v2105_v8, %v2104_v0 }
 0x18e   : > { %v785_v10 = vadd.f32 %v2042_v5, %v3048_v26  ;;  %v2187_v12 = vpop.f32.mrf.mxu1  ;;  %v3123_v13 = vadd.f32 %v899_v3, %v879_v4  ;;  %v1941_v4 = vld [vmem:[%s2783_s15 + $0x98] sm:$0xff] }
 0x18f   : > { %v2124_v32 = vpop.f32.mrf.mxu0 }
 0x190   : > { %v882_v14 = vadd.f32 %v2106_v11, %v785_v10  ;;  %v2125_v16 = vadd.f32 %v2124_v32, %v2123_v9  ;;  %v2188_v17 = vpop.f32.mrf.mxu1  ;;  %945 = vadd.xlane.f32.xlu0 %v3123_v13 }
 0x191   : > { %v2126_v35 = vpop.f32.mrf.mxu0  ;;  %v2189_v19 = vadd.f32 %v2188_v17, %v2187_v12 }
 0x192   : > { %v1288_v18 = vadd.f32 %v2125_v16, %v3048_v26  ;;  %v2190_v20 = vpop.f32.mrf.mxu1  ;;  %v3128_v21 = vadd.f32 %v900_v33, %v882_v14  ;;  %v1942_v16 = vld [vmem:[%s2783_s15 + $0xa0] sm:$0xff] }
 0x193   : > { %v2127_v36 = vpop.f32.mrf.mxu0 }
 0x194   : > { %v1385_v24 = vadd.f32 %v2189_v19, %v1288_v18  ;;  %v2128_v25 = vadd.f32 %v2127_v36, %v2126_v35  ;;  %v2191_v38 = vpop.f32.mrf.mxu1  ;;  %947 = vadd.xlane.f32.xlu1 %v3128_v21 }
 0x195   : > { %v2129_v39 = vpop.f32.mrf.mxu0  ;;  %v2192_v28 = vadd.f32 %v2191_v38, %v2190_v20  ;;  %v1943_v38 = vld [vmem:[%s2783_s15 + $0xa8] sm:$0xff] }
 0x196   : > { %v1291_v27 = vadd.f32 %v2128_v25, %v3048_v26  ;;  %v2193_v29 = vpop.f32.mrf.mxu1  ;;  %v3133_v41 = vadd.f32 %v1938_v22, %v1385_v24 }
 0x197   : > { %v2130_v42 = vpop.f32.mrf.mxu0 }
 0x198   : > { %v1388_v43 = vadd.f32 %v2192_v28, %v1291_v27  ;;  %v2131_v44 = vadd.f32 %v2130_v42, %v2129_v39  ;;  %v2194_v45 = vpop.f32.mrf.mxu1  ;;  %1480 = vadd.xlane.f32.xlu0 %v3133_v41 }
 0x199   : > { %v2132_v46 = vpop.f32.mrf.mxu0  ;;  %v2195_v49 = vadd.f32 %v2194_v45, %v2193_v29 }
 0x19a   : > { %v1296_v47 = vadd.f32 %v2131_v44, %v3048_v26  ;;  %v2196_v50 = vpop.f32.mrf.mxu1  ;;  %v3138_v52 = vadd.f32 %v1939_v31, %v1388_v43 }
 0x19b   : > { %v2133_v54 = vpop.f32.mrf.mxu0 }
 0x19c   : > { %v1393_v56 = vadd.f32 %v2195_v49, %v1296_v47  ;;  %v2134_v57 = vadd.f32 %v2133_v54, %v2132_v46  ;;  %v2197_v58 = vpop.f32.mrf.mxu1  ;;  %1482 = vadd.xlane.f32.xlu1 %v3138_v52  ;;  %v1944_v46 = vld [vmem:[%s2783_s15 + $0xb0] sm:$0xff] }
 0x19d   : > { %v2135_v60 = vpop.f32.mrf.mxu0  ;;  %v2198_v63 = vadd.f32 %v2197_v58, %v2196_v50 }
 0x19e   : > { %v1299_v62 = vadd.f32 %v2134_v57, %v3048_v26  ;;  %v2199_v0 = vpop.f32.mrf.mxu1  ;;  %v3143_v2 = vadd.f32 %v1940_v55, %v1393_v56 }
 0x19f   : > { %v2136_v3 = vpop.f32.mrf.mxu0 }
 0x1a0   : > { %v1396_v5 = vadd.f32 %v2198_v63, %v1299_v62  ;;  %v2137_v8 = vadd.f32 %v2136_v3, %v2135_v60  ;;  %v2200_v9 = vpop.f32.mrf.mxu1  ;;  %1484 = vadd.xlane.f32.xlu0 %v3143_v2  ;;  %v1945_v62 = vld [vmem:[%s2783_s15 + $0xb8] sm:$0xff] }
 0x1a1   : > { %v2138_v10 = vpop.f32.mrf.mxu0  ;;  %v2201_v12 = vadd.f32 %v2200_v9, %v2199_v0 }
 0x1a2   : > { %v1304_v11 = vadd.f32 %v2137_v8, %v3048_v26  ;;  %v2202_v32 = vpop.f32.mrf.mxu1  ;;  %v3148_v33 = vadd.f32 %v1941_v4, %v1396_v5 }
 0x1a3   : > { %v2139_v14 = vpop.f32.mrf.mxu0 }
 0x1a4   : > { %v1401_v17 = vadd.f32 %v2201_v12, %v1304_v11  ;;  %v2140_v35 = vadd.f32 %v2139_v14, %v2138_v10  ;;  %v2203_v18 = vpop.f32.mrf.mxu1  ;;  %1486 = vadd.xlane.f32.xlu1 %v3148_v33  ;;  %v1946_v12 = vld [vmem:[%s2783_s15 + $0xc0] sm:$0xff] }
 0x1a5   : > { %v2141_v19 = vpop.f32.mrf.mxu0  ;;  %v2204_v36 = vadd.f32 %v2203_v18, %v2202_v32 }
 0x1a6   : > { %v1307_v20 = vadd.f32 %v2140_v35, %v3048_v26  ;;  %v2205_v22 = vpop.f32.mrf.mxu1  ;;  %v3153_v24 = vadd.f32 %v1942_v16, %v1401_v17 }
 0x1a7   : > { %v2142_v25 = vpop.f32.mrf.mxu0 }
 0x1a8   : > { %v1404_v39 = vadd.f32 %v2204_v36, %v1307_v20  ;;  %v2143_v27 = vadd.f32 %v2142_v25, %v2141_v19  ;;  %v2206_v28 = vpop.f32.mrf.mxu1  ;;  %1488 = vadd.xlane.f32.xlu0 %v3153_v24 }
 0x1a9   : > { %v2144_v29 = vpop.f32.mrf.mxu0  ;;  %v2207_v31 = vadd.f32 %v2206_v28, %v2205_v22  ;;  %v1947_v22 = vld [vmem:[%s2783_s15 + $0xc8] sm:$0xff] }
 0x1aa   : > { %v1312_v42 = vadd.f32 %v2143_v27, %v3048_v26  ;;  %v2208_v43 = vpop.f32.mrf.mxu1  ;;  %v3158_v44 = vadd.f32 %v1943_v38, %v1404_v39 }
 0x1ab   : > { %v2145_v45 = vpop.f32.mrf.mxu0 }
 0x1ac   : > { %v1409_v47 = vadd.f32 %v2207_v31, %v1312_v42  ;;  %v2146_v49 = vadd.f32 %v2145_v45, %v2144_v29  ;;  %v2209_v50 = vpop.f32.mrf.mxu1  ;;  %1490 = vadd.xlane.f32.xlu1 %v3158_v44  ;;  %v1948_v45 = vld [vmem:[%s2783_s15 + $0xd0] sm:$0xff] }
 0x1ad   : > { %v2147_v54 = vpop.f32.mrf.mxu0  ;;  %v2210_v56 = vadd.f32 %v2209_v50, %v2208_v43 }
 0x1ae   : > { %v1315_v55 = vadd.f32 %v2146_v49, %v3048_v26  ;;  %v2211_v57 = vpop.f32.mrf.mxu1  ;;  %v3163_v58 = vadd.f32 %v1944_v46, %v1409_v47 }
 0x1af   : > { %v2148_v60 = vpop.f32.mrf.mxu0 }
 0x1b0   : > { %v1412_v63 = vadd.f32 %v2210_v56, %v1315_v55  ;;  %v2149_v0 = vadd.f32 %v2148_v60, %v2147_v54  ;;  %v2212_v3 = vpop.f32.mrf.mxu1  ;;  %1492 = vadd.xlane.f32.xlu0 %v3163_v58 }
 0x1b1   : > { %v2150_v4 = vpop.f32.mrf.mxu0  ;;  %v2213_v8 = vadd.f32 %v2212_v3, %v2211_v57 }
 0x1b2   : > { %v1320_v5 = vadd.f32 %v2149_v0, %v3048_v26  ;;  %v2214_v9 = vpop.f32.mrf.mxu1  ;;  %v3168_v10 = vadd.f32 %v1945_v62, %v1412_v63  ;;  %v1949_v62 = vld [vmem:[%s2783_s15 + $0xd8] sm:$0xff] }
 0x1b3   : > { %v2151_v11 = vpop.f32.mrf.mxu0 }
 0x1b4   : > { %v1417_v32 = vadd.f32 %v2213_v8, %v1320_v5  ;;  %v2152_v14 = vadd.f32 %v2151_v11, %v2150_v4  ;;  %v2215_v16 = vpop.f32.mrf.mxu1  ;;  %1494 = vadd.xlane.f32.xlu1 %v3168_v10 }
 0x1b5   : > { %v2153_v17 = vpop.f32.mrf.mxu0  ;;  %v2216_v18 = vadd.f32 %v2215_v16, %v2214_v9 }
 0x1b6   : > { %v1323_v35 = vadd.f32 %v2152_v14, %v3048_v26  ;;  %v2217_v19 = vpop.f32.mrf.mxu1  ;;  %v3173_v20 = vadd.f32 %v1946_v12, %v1417_v32  ;;  %v1950_v32 = vld [vmem:[%s2783_s15 + $0xe0] sm:$0xff] }
 0x1b7   : > { %v2154_v36 = vpop.f32.mrf.mxu0 }
 0x1b8   : > { %v1420_v25 = vadd.f32 %v2216_v18, %v1323_v35  ;;  %v2155_v38 = vadd.f32 %v2154_v36, %v2153_v17  ;;  %v2218_v39 = vpop.f32.mrf.mxu1  ;;  %1496 = vadd.xlane.f32.xlu0 %v3173_v20 }
 0x1b9   : > { %v2156_v27 = vpop.f32.mrf.mxu0  ;;  %v2219_v29 = vadd.f32 %v2218_v39, %v2217_v19 }
 0x1ba   : > { %v1328_v28 = vadd.f32 %v2155_v38, %v3048_v26  ;;  %v2220_v42 = vpop.f32.mrf.mxu1  ;;  %v3178_v31 = vadd.f32 %v1947_v22, %v1420_v25  ;;  %v1951_v38 = vld [vmem:[%s2783_s15 + $0xe8] sm:$0xff] }
 0x1bb   : > { %v2157_v43 = vpop.f32.mrf.mxu0 }
 0x1bc   : > { %v1425_v46 = vadd.f32 %v2219_v29, %v1328_v28  ;;  %v2158_v47 = vadd.f32 %v2157_v43, %v2156_v27  ;;  %v2221_v49 = vpop.f32.mrf.mxu1  ;;  %1498 = vadd.xlane.f32.xlu1 %v3178_v31 }
 0x1bd   : > { %v2159_v50 = vpop.f32.mrf.mxu0  ;;  %v2222_v55 = vadd.f32 %v2221_v49, %v2220_v42  ;;  %v1952_v49 = vld [vmem:[%s2783_s15 + $0xf0] sm:$0xff] }
 0x1be   : > { %v1331_v54 = vadd.f32 %v2158_v47, %v3048_v26  ;;  %v2223_v56 = vpop.f32.mrf.mxu1  ;;  %v3183_v57 = vadd.f32 %v1948_v45, %v1425_v46 }
 0x1bf   : > { %v2160_v60 = vpop.f32.mrf.mxu0 }
 0x1c0   : > { %v1428_v63 = vadd.f32 %v2222_v55, %v1331_v54  ;;  %v2161_v0 = vadd.f32 %v2160_v60, %v2159_v50  ;;  %v2224_v3 = vpop.f32.mrf.mxu1  ;;  %1500 = vadd.xlane.f32.xlu0 %v3183_v57 }
 0x1c1   : > { %v2162_v4 = vpop.f32.mrf.mxu0  ;;  %v2225_v8 = vadd.f32 %v2224_v3, %v2223_v56 }
 0x1c2   : > { %v1336_v5 = vadd.f32 %v2161_v0, %v3048_v26  ;;  %v2226_v9 = vpop.f32.mrf.mxu1  ;;  %v3188_v11 = vadd.f32 %v1949_v62, %v1428_v63  ;;  %v1953_v63 = vld [vmem:[%s2783_s15 + $0xf8] sm:$0xff] }
 0x1c3   : > { %v2163_v12 = vpop.f32.mrf.mxu0 }
 0x1c4   : > { %v1433_v14 = vadd.f32 %v2225_v8, %v1336_v5  ;;  %v2164_v16 = vadd.f32 %v2163_v12, %v2162_v4  ;;  %v2227_v17 = vpop.f32.mrf.mxu1  ;;  %1502 = vadd.xlane.f32.xlu1 %v3188_v11 }
 0x1c5   : > { %v2165_v35 = vpop.f32.mrf.mxu0  ;;  %v2228_v19 = vadd.f32 %v2227_v17, %v2226_v9 }
 0x1c6   : > { %v1339_v18 = vadd.f32 %v2164_v16, %v3048_v26  ;;  %v2229_v36 = vpop.f32.mrf.mxu1  ;;  %v3193_v22 = vadd.f32 %v1950_v32, %v1433_v14 }
 0x1c7   : > { %v2166_v25 = vpop.f32.mrf.mxu0 }
 0x1c8   : > { %v1436_v39 = vadd.f32 %v2228_v19, %v1339_v18  ;;  %v2167_v27 = vadd.f32 %v2166_v25, %v2165_v35  ;;  %v2230_v28 = vpop.f32.mrf.mxu1  ;;  %1504 = vadd.xlane.f32.xlu0 %v3193_v22 }
 0x1c9   : > { %v2168_v29 = vpop.f32.mrf.mxu0  ;;  %v2231_v43 = vadd.f32 %v2230_v28, %v2229_v36 }
 0x1ca   : > { %v1344_v42 = vadd.f32 %v2167_v27, %v3048_v26  ;;  %v2232_v45 = vpop.f32.mrf.mxu1  ;;  %v3198_v46 = vadd.f32 %v1951_v38, %v1436_v39 }
 0x1cb   : > { %v2169_v47 = vpop.f32.mrf.mxu0 }
 0x1cc   : > { %v1441_v50 = vadd.f32 %v2231_v43, %v1344_v42  ;;  %v2170_v54 = vadd.f32 %v2169_v47, %v2168_v29  ;;  %v2233_v55 = vpop.f32.mrf.mxu1  ;;  %1506 = vadd.xlane.f32.xlu1 %v3198_v46 }
 0x1cd   : > { %v2234_v60 = vadd.f32 %v2233_v55, %v2232_v45 }
 0x1ce   : > { %v1347_v56 = vadd.f32 %v2170_v54, %v3048_v26  ;;  %v3203_v62 = vadd.f32 %v1952_v49, %v1441_v50 }
 0x1d0   : > { %v1444_v0 = vadd.f32 %v2234_v60, %v1347_v56  ;;  %1508 = vadd.xlane.f32.xlu0 %v3203_v62 }
 0x1d2   : > { %v3207_v3 = vadd.f32 %v1953_v63, %v1444_v0 }
 0x1d4   : > { %1510 = vadd.xlane.f32.xlu1 %v3207_v3 }
 0x1e1   : > { %v918_v4 = vpop.xlane.xlu0 %917 }
 0x1e2   : > { %v950_v5 = vmul.f32 0.0078125, %v918_v4 }
 0x1e4   : > { %v3211_v8 = vsub.f32 %v3053_v51, %v950_v5 }
 0x1e5   : > { %v920_v9 = vpop.xlane.xlu0 %919 }
 0x1e6   : > { %v951_v12 = vmul.f32 0.0078125, %v920_v9  ;;  %v982_v26 = vmul.f32 %v3211_v8, %v3211_v8 }
 0x1e8   : > { %v3216_v32 = vsub.f32 %v3058_v61, %v951_v12  ;;  %998 = vadd.xlane.f32.xlu0 %v982_v26 }
 0x1e9   : > { %v922_v14 = vpop.xlane.xlu1 %921 }
 0x1ea   : > { %v952_v16 = vmul.f32 0.0078125, %v922_v14  ;;  %v983_v17 = vmul.f32 %v3216_v32, %v3216_v32 }
 0x1ec   : > { %v3221_v35 = vsub.f32 %v3063_v7, %v952_v16  ;;  %1000 = vadd.xlane.f32.xlu1 %v983_v17 }
 0x1ed   : > { %v924_v51 = vpop.xlane.xlu1 %923 }
 0x1ee   : > { %v953_v18 = vmul.f32 0.0078125, %v924_v51  ;;  %v984_v19 = vmul.f32 %v3221_v35, %v3221_v35 }
 0x1f0   : > { %v3226_v36 = vsub.f32 %v3068_v34, %v953_v18  ;;  %1002 = vadd.xlane.f32.xlu0 %v984_v19 }
 0x1f1   : > { %v926_v61 = vpop.xlane.xlu0 %925 }
 0x1f2   : > { %v954_v25 = vmul.f32 0.0078125, %v926_v61  ;;  %v985_v38 = vmul.f32 %v3226_v36, %v3226_v36 }
 0x1f4   : > { %v3231_v39 = vsub.f32 %v3073_v37, %v954_v25  ;;  %1004 = vadd.xlane.f32.xlu1 %v985_v38 }
 0x1f5   : > { %v928_v7 = vpop.xlane.xlu1 %927 }
 0x1f6   : > { %v955_v27 = vmul.f32 0.0078125, %v928_v7  ;;  %v986_v28 = vmul.f32 %v3231_v39, %v3231_v39 }
 0x1f8   : > { %v3236_v29 = vsub.f32 %v3078_v40, %v955_v27  ;;  %1006 = vadd.xlane.f32.xlu0 %v986_v28 }
 0x1f9   : > { %v930_v34 = vpop.xlane.xlu0 %929 }
 0x1fa   : > { %v956_v42 = vmul.f32 0.0078125, %v930_v34  ;;  %v987_v43 = vmul.f32 %v3236_v29, %v3236_v29 }
 0x1fc   : > { %v3241_v45 = vsub.f32 %v3083_v48, %v956_v42  ;;  %1008 = vadd.xlane.f32.xlu1 %v987_v43 }
 0x1fd   : > { %v932_v37 = vpop.xlane.xlu1 %931 }
 0x1fe   : > { %v957_v47 = vmul.f32 0.0078125, %v932_v37  ;;  %v988_v49 = vmul.f32 %v3241_v45, %v3241_v45 }
 0x200   : > { %v3246_v50 = vsub.f32 %v3088_v59, %v957_v47  ;;  %1010 = vadd.xlane.f32.xlu0 %v988_v49 }
 0x201   : > { %v934_v40 = vpop.xlane.xlu0 %933 }
 0x202   : > { %v958_v54 = vmul.f32 0.0078125, %v934_v40  ;;  %v989_v55 = vmul.f32 %v3246_v50, %v3246_v50 }
 0x204   : > { %v3251_v56 = vsub.f32 %v3093_v6, %v958_v54  ;;  %1012 = vadd.xlane.f32.xlu1 %v989_v55 }
 0x205   : > { %v936_v48 = vpop.xlane.xlu1 %935 }
 0x206   : > { %v959_v60 = vmul.f32 0.0078125, %v936_v48  ;;  %v990_v63 = vmul.f32 %v3251_v56, %v3251_v56 }
 0x208   : > { %v3256_v0 = vsub.f32 %v3098_v15, %v959_v60  ;;  %1014 = vadd.xlane.f32.xlu0 %v990_v63 }
 0x209   : > { %v938_v59 = vpop.xlane.xlu0 %937 }
 0x20a   : > { %v960_v4 = vmul.f32 0.0078125, %v938_v59  ;;  %v991_v5 = vmul.f32 %v3256_v0, %v3256_v0 }
 0x20c   : > { %v3261_v9 = vsub.f32 %v3103_v23, %v960_v4  ;;  %1016 = vadd.xlane.f32.xlu1 %v991_v5 }
 0x20d   : > { %v940_v6 = vpop.xlane.xlu1 %939 }
 0x20e   : > { %v961_v12 = vmul.f32 0.0078125, %v940_v6  ;;  %v992_v26 = vmul.f32 %v3261_v9, %v3261_v9 }
 0x210   : > { %v3266_v14 = vsub.f32 %v3108_v30, %v961_v12  ;;  %1018 = vadd.xlane.f32.xlu0 %v992_v26 }
 0x211   : > { %v942_v15 = vpop.xlane.xlu0 %941 }
 0x212   : > { %v962_v16 = vmul.f32 0.0078125, %v942_v15  ;;  %v993_v17 = vmul.f32 %v3266_v14, %v3266_v14 }
 0x214   : > { %v3271_v51 = vsub.f32 %v3113_v53, %v962_v16  ;;  %1020 = vadd.xlane.f32.xlu1 %v993_v17 }
 0x215   : > { %v944_v23 = vpop.xlane.xlu1 %943 }
 0x216   : > { %v963_v18 = vmul.f32 0.0078125, %v944_v23  ;;  %v994_v19 = vmul.f32 %v3271_v51, %v3271_v51 }
 0x218   : > { %v3276_v61 = vsub.f32 %v3118_v1, %v963_v18  ;;  %1022 = vadd.xlane.f32.xlu0 %v994_v19 }
 0x219   : > { %v946_v30 = vpop.xlane.xlu0 %945 }
 0x21a   : > { %v964_v25 = vmul.f32 0.0078125, %v946_v30  ;;  %v995_v38 = vmul.f32 %v3276_v61, %v3276_v61 }
 0x21c   : > { %v3281_v7 = vsub.f32 %v3123_v13, %v964_v25  ;;  %1024 = vadd.xlane.f32.xlu1 %v995_v38 }
 0x21d   : > { %v948_v53 = vpop.xlane.xlu1 %947 }
 0x21e   : > { %v965_v27 = vmul.f32 0.0078125, %v948_v53  ;;  %v996_v28 = vmul.f32 %v3281_v7, %v3281_v7 }
 0x220   : > { %v3286_v34 = vsub.f32 %v3128_v21, %v965_v27  ;;  %1026 = vadd.xlane.f32.xlu0 %v996_v28 }
 0x221   : > { %v1481_v1 = vpop.xlane.xlu0 %1480 }
 0x222   : > { %v1512_v42 = vmul.f32 0.0078125, %v1481_v1  ;;  %v997_v43 = vmul.f32 %v3286_v34, %v3286_v34 }
 0x224   : > { %v3291_v37 = vsub.f32 %v3133_v41, %v1512_v42  ;;  %1028 = vadd.xlane.f32.xlu1 %v997_v43 }
 0x225   : > { %v1483_v13 = vpop.xlane.xlu1 %1482 }
 0x226   : > { %v1513_v47 = vmul.f32 0.0078125, %v1483_v13  ;;  %v1544_v49 = vmul.f32 %v3291_v37, %v3291_v37 }
 0x228   : > { %v3296_v40 = vsub.f32 %v3138_v52, %v1513_v47  ;;  %1560 = vadd.xlane.f32.xlu0 %v1544_v49 }
 0x229   : > { %v1485_v21 = vpop.xlane.xlu0 %1484 }
 0x22a   : > { %v1514_v54 = vmul.f32 0.0078125, %v1485_v21  ;;  %v1545_v55 = vmul.f32 %v3296_v40, %v3296_v40 }
 0x22c   : > { %v3301_v48 = vsub.f32 %v3143_v2, %v1514_v54  ;;  %1562 = vadd.xlane.f32.xlu1 %v1545_v55 }
 0x22d   : > { %v1487_v41 = vpop.xlane.xlu1 %1486 }
 0x22e   : > { %v1515_v60 = vmul.f32 0.0078125, %v1487_v41  ;;  %v1546_v63 = vmul.f32 %v3301_v48, %v3301_v48 }
 0x230   : > { %v3306_v59 = vsub.f32 %v3148_v33, %v1515_v60  ;;  %1564 = vadd.xlane.f32.xlu0 %v1546_v63 }
 0x231   : > { %v1489_v52 = vpop.xlane.xlu0 %1488 }
 0x232   : > { %v1516_v4 = vmul.f32 0.0078125, %v1489_v52  ;;  %v1547_v5 = vmul.f32 %v3306_v59, %v3306_v59 }
 0x234   : > { %v3311_v6 = vsub.f32 %v3153_v24, %v1516_v4  ;;  %1566 = vadd.xlane.f32.xlu1 %v1547_v5 }
 0x235   : > { %v1491_v2 = vpop.xlane.xlu1 %1490 }
 0x236   : > { %v1517_v12 = vmul.f32 0.0078125, %v1491_v2  ;;  %v1548_v26 = vmul.f32 %v3311_v6, %v3311_v6 }
 0x238   : > { %v3316_v15 = vsub.f32 %v3158_v44, %v1517_v12  ;;  %1568 = vadd.xlane.f32.xlu0 %v1548_v26 }
 0x239   : > { %v1493_v33 = vpop.xlane.xlu0 %1492 }
 0x23a   : > { %v1518_v16 = vmul.f32 0.0078125, %v1493_v33  ;;  %v1549_v17 = vmul.f32 %v3316_v15, %v3316_v15 }
 0x23c   : > { %v3321_v23 = vsub.f32 %v3163_v58, %v1518_v16  ;;  %1570 = vadd.xlane.f32.xlu1 %v1549_v17 }
 0x23d   : > { %v1495_v24 = vpop.xlane.xlu1 %1494 }
 0x23e   : > { %v1519_v18 = vmul.f32 0.0078125, %v1495_v24  ;;  %v1550_v19 = vmul.f32 %v3321_v23, %v3321_v23 }
 0x240   : > { %v3326_v30 = vsub.f32 %v3168_v10, %v1519_v18  ;;  %1572 = vadd.xlane.f32.xlu0 %v1550_v19 }
 0x241   : > { %v1497_v44 = vpop.xlane.xlu0 %1496 }
 0x242   : > { %v1520_v25 = vmul.f32 0.0078125, %v1497_v44  ;;  %v1551_v38 = vmul.f32 %v3326_v30, %v3326_v30 }
 0x244   : > { %v3331_v53 = vsub.f32 %v3173_v20, %v1520_v25  ;;  %1574 = vadd.xlane.f32.xlu1 %v1551_v38 }
 0x245   : > { %v1499_v58 = vpop.xlane.xlu1 %1498 }
 0x246   : > { %v1521_v27 = vmul.f32 0.0078125, %v1499_v58  ;;  %v1552_v28 = vmul.f32 %v3331_v53, %v3331_v53 }
 0x248   : > { %v3336_v1 = vsub.f32 %v3178_v31, %v1521_v27  ;;  %1576 = vadd.xlane.f32.xlu0 %v1552_v28 }
 0x249   : > { %v1501_v10 = vpop.xlane.xlu0 %1500 }
 0x24a   : > { %v1522_v42 = vmul.f32 0.0078125, %v1501_v10  ;;  %v1553_v43 = vmul.f32 %v3336_v1, %v3336_v1 }
 0x24c   : > { %v3341_v13 = vsub.f32 %v3183_v57, %v1522_v42  ;;  %1578 = vadd.xlane.f32.xlu1 %v1553_v43  ;;  %v3373_v43 = vld [vmem:[%s3566_s4] ss:$0 sm:$0xff] }
 0x24d   : > { %v1503_v20 = vpop.xlane.xlu1 %1502 }
 0x24e   : > { %v1523_v47 = vmul.f32 0.0078125, %v1503_v20  ;;  %v1554_v49 = vmul.f32 %v3341_v13, %v3341_v13 }
 0x250   : > { %v3346_v21 = vsub.f32 %v3188_v11, %v1523_v47  ;;  %1580 = vadd.xlane.f32.xlu0 %v1554_v49  ;;  %v3379_v49 = vld [vmem:[%s3567_s5] ss:$0 sm:$0xff] }
 0x251   : > { %v1505_v31 = vpop.xlane.xlu0 %1504 }
 0x252   : > { %v1524_v54 = vmul.f32 0.0078125, %v1505_v31  ;;  %v1555_v55 = vmul.f32 %v3346_v21, %v3346_v21 }
 0x254   : > { %v3351_v41 = vsub.f32 %v3193_v22, %v1524_v54  ;;  %1582 = vadd.xlane.f32.xlu1 %v1555_v55 }
 0x255   : > { %v1507_v57 = vpop.xlane.xlu1 %1506 }
 0x256   : > { %v1525_v60 = vmul.f32 0.0078125, %v1507_v57  ;;  %v1556_v63 = vmul.f32 %v3351_v41, %v3351_v41 }
 0x258   : > { %v3356_v52 = vsub.f32 %v3198_v46, %v1525_v60  ;;  %1584 = vadd.xlane.f32.xlu0 %v1556_v63 }
 0x259   : > { %v1509_v11 = vpop.xlane.xlu0 %1508 }
 0x25a   : > { %v1526_v4 = vmul.f32 0.0078125, %v1509_v11  ;;  %v1557_v5 = vmul.f32 %v3356_v52, %v3356_v52 }
 0x25c   : > { %v3361_v2 = vsub.f32 %v3203_v62, %v1526_v4  ;;  %1586 = vadd.xlane.f32.xlu1 %v1557_v5 }
 0x25d   : > { %v1511_v22 = vpop.xlane.xlu1 %1510 }
 0x25e   : > { %v1527_v12 = vmul.f32 0.0078125, %v1511_v22  ;;  %v1558_v26 = vmul.f32 %v3361_v2, %v3361_v2 }
 0x260   : > { %v3366_v33 = vsub.f32 %v3207_v3, %v1527_v12  ;;  %1588 = vadd.xlane.f32.xlu0 %v1558_v26 }
 0x262   : > { %v1559_v46 = vmul.f32 %v3366_v33, %v3366_v33 }
 0x264   : > { %1590 = vadd.xlane.f32.xlu1 %v1559_v46 }
 0x271   : > { %v999_v16 = vpop.xlane.xlu0 %998 }
 0x272   : > { %v1030_v17 = vmul.f32 0.0078125, %v999_v16 }
 0x274   : > { %v1046_v24 = vadd.f32 1e-12, %v1030_v17 }
 0x275   : > { %v1001_v18 = vpop.xlane.xlu1 %1000 }
 0x276   : > { %2337 = vrsqrt.f32 %v1046_v24  ;;  %v1031_v62 = vmul.f32 0.0078125, %v1001_v18 }
 0x278   : > { %v1047_v19 = vadd.f32 1e-12, %v1031_v62 }
 0x279   : > { %v1003_v44 = vpop.xlane.xlu0 %1002 }
 0x27a   : > { %2339 = vrsqrt.f32 %v1047_v19  ;;  %v1032_v25 = vmul.f32 0.0078125, %v1003_v44 }
 0x27c   : > { %v1048_v38 = vadd.f32 1e-12, %v1032_v25 }
 0x27d   : > { %v1005_v58 = vpop.xlane.xlu1 %1004 }
 0x27e   : > { %2341 = vrsqrt.f32 %v1048_v38  ;;  %v1033_v3 = vmul.f32 0.0078125, %v1005_v58 }
 0x280   : > { %v1049_v27 = vadd.f32 1e-12, %v1033_v3 }
 0x281   : > { %v1007_v28 = vpop.xlane.xlu0 %1006 }
 0x282   : > { %2343 = vrsqrt.f32 %v1049_v27  ;;  %v1034_v10 = vmul.f32 0.0078125, %v1007_v28 }
 0x283   : > { %v2338_v42 = vpop.eup %2337 }
 0x284   : > { %v1078_v20 = vmul.f32 %v2338_v42, %v3211_v8  ;;  %v1050_v47 = vadd.f32 1e-12, %v1034_v10 }
 0x285   : > { %v1009_v31 = vpop.xlane.xlu1 %1008 }
 0x286   : > { %v1100_v54 = vmul.f32 %v3373_v43, %v1078_v20  ;;  %2345 = vrsqrt.f32 %v1050_v47  ;;  %v1035_v55 = vmul.f32 0.0078125, %v1009_v31 }
 0x287   : > { %v2340_v57 = vpop.eup %2339 }
 0x288   : > { %v1122_v60 = vadd.f32 %v3379_v49, %v1100_v54  ;;  %v1079_v63 = vmul.f32 %v2340_v57, %v3216_v32  ;;  %v1051_v11 = vadd.f32 1e-12, %v1035_v55 }
 0x289   : > { %v1011_v4 = vpop.xlane.xlu0 %1010 }
 0x28a   : > { %1138 = vst [vmem:[%s3386_s7] sm:$0xff] %v1122_v60  ;;  %v1101_v8 = vmul.f32 %v3373_v43, %v1079_v63  ;;  %2347 = vrsqrt.f32 %v1051_v11  ;;  %v1036_v5 = vmul.f32 0.0078125, %v1011_v4 }
 0x28b   : > { %v2342_v22 = vpop.eup %2341 }
 0x28c   : > { %v1123_v12 = vadd.f32 %v3379_v49, %v1101_v8  ;;  %v1080_v26 = vmul.f32 %v2342_v22, %v3221_v35  ;;  %v1052_v46 = vadd.f32 1e-12, %v1036_v5 }
 0x28d   : > { %v1013_v32 = vpop.xlane.xlu1 %1012 }
 0x28e   : > { %1139 = vst [vmem:[%s3386_s7 + $0x8] sm:$0xff] %v1123_v12  ;;  %v1102_v16 = vmul.f32 %v3373_v43, %v1080_v26  ;;  %2349 = vrsqrt.f32 %v1052_v46  ;;  %v1037_v17 = vmul.f32 0.0078125, %v1013_v32 }
 0x28f   : > { %v2344_v24 = vpop.eup %2343 }
 0x290   : > { %v1124_v18 = vadd.f32 %v3379_v49, %v1102_v16  ;;  %v1081_v62 = vmul.f32 %v2344_v24, %v3226_v36  ;;  %v1053_v19 = vadd.f32 1e-12, %v1037_v17 }
 0x291   : > { %v1015_v44 = vpop.xlane.xlu0 %1014 }
 0x292   : > { %1140 = vst [vmem:[%s3386_s7 + $0x10] sm:$0xff] %v1124_v18  ;;  %v1103_v25 = vmul.f32 %v3373_v43, %v1081_v62  ;;  %2351 = vrsqrt.f32 %v1053_v19  ;;  %v1038_v35 = vmul.f32 0.0078125, %v1015_v44 }
 0x293   : > { %v2346_v38 = vpop.eup %2345 }
 0x294   : > { %v1125_v58 = vadd.f32 %v3379_v49, %v1103_v25  ;;  %v1082_v3 = vmul.f32 %v2346_v38, %v3231_v39  ;;  %v1054_v27 = vadd.f32 1e-12, %v1038_v35 }
 0x295   : > { %v1017_v28 = vpop.xlane.xlu1 %1016 }
 0x296   : > { %1141 = vst [vmem:[%s3386_s7 + $0x18] sm:$0xff] %v1125_v58  ;;  %v1104_v10 = vmul.f32 %v3373_v43, %v1082_v3  ;;  %2353 = vrsqrt.f32 %v1054_v27  ;;  %v1039_v36 = vmul.f32 0.0078125, %v1017_v28 }
 0x297   : > { %v2348_v42 = vpop.eup %2347 }
 0x298   : > { %v1126_v20 = vadd.f32 %v3379_v49, %v1104_v10  ;;  %v1083_v47 = vmul.f32 %v2348_v42, %v3236_v29  ;;  %v1055_v31 = vadd.f32 1e-12, %v1039_v36 }
 0x299   : > { %v1019_v54 = vpop.xlane.xlu0 %1018 }
 0x29a   : > { %1142 = vst [vmem:[%s3386_s7 + $0x20] sm:$0xff] %v1126_v20  ;;  %v1105_v55 = vmul.f32 %v3373_v43, %v1083_v47  ;;  %2355 = vrsqrt.f32 %v1055_v31  ;;  %v1040_v39 = vmul.f32 0.0078125, %v1019_v54 }
 0x29b   : > { %v2350_v57 = vpop.eup %2349 }
 0x29c   : > { %v1127_v60 = vadd.f32 %v3379_v49, %v1105_v55  ;;  %v1084_v63 = vmul.f32 %v2350_v57, %v3241_v45  ;;  %v1056_v11 = vadd.f32 1e-12, %v1040_v39 }
 0x29d   : > { %v1021_v4 = vpop.xlane.xlu1 %1020 }
 0x29e   : > { %1143 = vst [vmem:[%s3386_s7 + $0x28] sm:$0xff] %v1127_v60  ;;  %v1106_v8 = vmul.f32 %v3373_v43, %v1084_v63  ;;  %2357 = vrsqrt.f32 %v1056_v11  ;;  %v1041_v29 = vmul.f32 0.0078125, %v1021_v4 }
 0x29f   : > { %v2352_v5 = vpop.eup %2351 }
 0x2a0   : > { %v1128_v22 = vadd.f32 %v3379_v49, %v1106_v8  ;;  %v1085_v12 = vmul.f32 %v2352_v5, %v3246_v50  ;;  %v1057_v26 = vadd.f32 1e-12, %v1041_v29 }
 0x2a1   : > { %v1023_v46 = vpop.xlane.xlu0 %1022 }
 0x2a2   : > { %1144 = vst [vmem:[%s3386_s7 + $0x30] sm:$0xff] %v1128_v22  ;;  %v1107_v32 = vmul.f32 %v3373_v43, %v1085_v12  ;;  %2359 = vrsqrt.f32 %v1057_v26  ;;  %v1042_v45 = vmul.f32 0.0078125, %v1023_v46 }
 0x2a3   : > { %v2354_v16 = vpop.eup %2353 }
 0x2a4   : > { %v1129_v17 = vadd.f32 %v3379_v49, %v1107_v32  ;;  %v1086_v24 = vmul.f32 %v2354_v16, %v3251_v56  ;;  %v1058_v18 = vadd.f32 1e-12, %v1042_v45 }
 0x2a5   : > { %v1025_v62 = vpop.xlane.xlu1 %1024 }
 0x2a6   : > { %1145 = vst [vmem:[%s3386_s7 + $0x38] sm:$0xff] %v1129_v17  ;;  %v1108_v19 = vmul.f32 %v3373_v43, %v1086_v24  ;;  %2361 = vrsqrt.f32 %v1058_v18  ;;  %v1043_v50 = vmul.f32 0.0078125, %v1025_v62 }
 0x2a7   : > { %v2356_v44 = vpop.eup %2355 }
 0x2a8   : > { %v1130_v25 = vadd.f32 %v3379_v49, %v1108_v19  ;;  %v1087_v35 = vmul.f32 %v2356_v44, %v3256_v0  ;;  %v1059_v38 = vadd.f32 1e-12, %v1043_v50 }
 0x2a9   : > { %v1027_v58 = vpop.xlane.xlu0 %1026 }
 0x2aa   : > { %1146 = vst [vmem:[%s3386_s7 + $0x40] sm:$0xff] %v1130_v25  ;;  %v1109_v3 = vmul.f32 %v3373_v43, %v1087_v35  ;;  %2363 = vrsqrt.f32 %v1059_v38  ;;  %v1044_v56 = vmul.f32 0.0078125, %v1027_v58 }
 0x2ab   : > { %v2358_v27 = vpop.eup %2357 }
 0x2ac   : > { %v1131_v28 = vadd.f32 %v3379_v49, %v1109_v3  ;;  %v1088_v10 = vmul.f32 %v2358_v27, %v3261_v9  ;;  %v1060_v36 = vadd.f32 1e-12, %v1044_v56 }
 0x2ad   : > { %v1029_v42 = vpop.xlane.xlu1 %1028 }
 0x2ae   : > { %1147 = vst [vmem:[%s3386_s7 + $0x48] sm:$0xff] %v1131_v28  ;;  %v1110_v20 = vmul.f32 %v3373_v43, %v1088_v10  ;;  %2365 = vrsqrt.f32 %v1060_v36  ;;  %v1045_v0 = vmul.f32 0.0078125, %v1029_v42 }
 0x2af   : > { %v2360_v47 = vpop.eup %2359 }
 0x2b0   : > { %v1132_v31 = vadd.f32 %v3379_v49, %v1110_v20  ;;  %v1089_v54 = vmul.f32 %v2360_v47, %v3266_v14  ;;  %v1061_v55 = vadd.f32 1e-12, %v1045_v0 }
 0x2b1   : > { %v1561_v39 = vpop.xlane.xlu0 %1560 }
 0x2b2   : > { %1148 = vst [vmem:[%s3386_s7 + $0x50] sm:$0xff] %v1132_v31  ;;  %v1111_v57 = vmul.f32 %v3373_v43, %v1089_v54  ;;  %2367 = vrsqrt.f32 %v1061_v55  ;;  %v1592_v9 = vmul.f32 0.0078125, %v1561_v39 }
 0x2b3   : > { %v2362_v60 = vpop.eup %2361 }
 0x2b4   : > { %v1133_v63 = vadd.f32 %v3379_v49, %v1111_v57  ;;  %v1090_v11 = vmul.f32 %v2362_v60, %v3271_v51  ;;  %v1608_v4 = vadd.f32 1e-12, %v1592_v9 }
 0x2b5   : > { %v1563_v8 = vpop.xlane.xlu1 %1562 }
 0x2b6   : > { %1149 = vst [vmem:[%s3386_s7 + $0x58] sm:$0xff] %v1133_v63  ;;  %v1112_v29 = vmul.f32 %v3373_v43, %v1090_v11  ;;  %2369 = vrsqrt.f32 %v1608_v4  ;;  %v1593_v14 = vmul.f32 0.0078125, %v1563_v8 }
 0x2b7   : > { %v2364_v5 = vpop.eup %2363 }
 0x2b8   : > { %v1134_v22 = vadd.f32 %v3379_v49, %v1112_v29  ;;  %v1091_v12 = vmul.f32 %v2364_v5, %v3276_v61  ;;  %v1609_v26 = vadd.f32 1e-12, %v1593_v14 }
 0x2b9   : > { %v1565_v46 = vpop.xlane.xlu0 %1564 }
 0x2ba   : > { %1150 = vst [vmem:[%s3386_s7 + $0x60] sm:$0xff] %v1134_v22  ;;  %v1113_v32 = vmul.f32 %v3373_v43, %v1091_v12  ;;  %2371 = vrsqrt.f32 %v1609_v26  ;;  %v1594_v51 = vmul.f32 0.0078125, %v1565_v46 }
 0x2bb   : > { %v2366_v45 = vpop.eup %2365 }
 0x2bc   : > { %v1135_v16 = vadd.f32 %v3379_v49, %v1113_v32  ;;  %v1092_v17 = vmul.f32 %v2366_v45, %v3281_v7  ;;  %v1610_v24 = vadd.f32 1e-12, %v1594_v51 }
 0x2bd   : > { %v1567_v18 = vpop.xlane.xlu1 %1566 }
 0x2be   : > { %1151 = vst [vmem:[%s3386_s7 + $0x68] sm:$0xff] %v1135_v16  ;;  %v1114_v62 = vmul.f32 %v3373_v43, %v1092_v17  ;;  %2373 = vrsqrt.f32 %v1610_v24  ;;  %v1595_v61 = vmul.f32 0.0078125, %v1567_v18 }
 0x2bf   : > { %v2368_v19 = vpop.eup %2367 }
 0x2c0   : > { %v1136_v50 = vadd.f32 %v3379_v49, %v1114_v62  ;;  %v1093_v44 = vmul.f32 %v2368_v19, %v3286_v34  ;;  %v1611_v25 = vadd.f32 1e-12, %v1595_v61 }
 0x2c1   : > { %v1569_v35 = vpop.xlane.xlu0 %1568 }
 0x2c2   : > { %1152 = vst [vmem:[%s3386_s7 + $0x70] sm:$0xff] %v1136_v50  ;;  %v1115_v38 = vmul.f32 %v3373_v43, %v1093_v44  ;;  %2375 = vrsqrt.f32 %v1611_v25  ;;  %v1596_v7 = vmul.f32 0.0078125, %v1569_v35 }
 0x2c3   : > { %v2370_v58 = vpop.eup %2369 }
 0x2c4   : > { %v1137_v3 = vadd.f32 %v3379_v49, %v1115_v38  ;;  %v1640_v56 = vmul.f32 %v2370_v58, %v3291_v37  ;;  %v1612_v27 = vadd.f32 1e-12, %v1596_v7 }
 0x2c5   : > { %v1571_v28 = vpop.xlane.xlu1 %1570 }
 0x2c6   : > { %1153 = vst [vmem:[%s3386_s7 + $0x78] sm:$0xff] %v1137_v3  ;;  %v1656_v10 = vmul.f32 %v3373_v43, %v1640_v56  ;;  %2377 = vrsqrt.f32 %v1612_v27  ;;  %v1597_v34 = vmul.f32 0.0078125, %v1571_v28 }
 0x2c7   : > { %v2372_v36 = vpop.eup %2371 }
 0x2c8   : > { %v1672_v42 = vadd.f32 %v3379_v49, %v1656_v10  ;;  %v1641_v20 = vmul.f32 %v2372_v36, %v3296_v40  ;;  %v1613_v0 = vadd.f32 1e-12, %v1597_v34 }
 0x2c9   : > { %v1573_v47 = vpop.xlane.xlu0 %1572 }
 0x2ca   : > { %1954 = vst [vmem:[%s3386_s7 + $0x80] sm:$0xff] %v1672_v42  ;;  %v1657_v31 = vmul.f32 %v3373_v43, %v1641_v20  ;;  %2379 = vrsqrt.f32 %v1613_v0  ;;  %v1598_v37 = vmul.f32 0.0078125, %v1573_v47 }
 0x2cb   : > { %v2374_v54 = vpop.eup %2373 }
 0x2cc   : > { %v1673_v55 = vadd.f32 %v3379_v49, %v1657_v31  ;;  %v1642_v39 = vmul.f32 %v2374_v54, %v3301_v48  ;;  %v1614_v57 = vadd.f32 1e-12, %v1598_v37 }
 0x2cd   : > { %v1575_v9 = vpop.xlane.xlu1 %1574 }
 0x2ce   : > { %1955 = vst [vmem:[%s3386_s7 + $0x88] sm:$0xff] %v1673_v55  ;;  %v1658_v60 = vmul.f32 %v3373_v43, %v1642_v39  ;;  %2381 = vrsqrt.f32 %v1614_v57  ;;  %v1599_v40 = vmul.f32 0.0078125, %v1575_v9 }
 0x2cf   : > { %v2376_v63 = vpop.eup %2375 }
 0x2d0   : > { %v1674_v11 = vadd.f32 %v3379_v49, %v1658_v60  ;;  %v1643_v4 = vmul.f32 %v2376_v63, %v3306_v59  ;;  %v1615_v8 = vadd.f32 1e-12, %v1599_v40 }
 0x2d1   : > { %v1577_v29 = vpop.xlane.xlu0 %1576 }
 0x2d2   : > { %1956 = vst [vmem:[%s3386_s7 + $0x90] sm:$0xff] %v1674_v11  ;;  %v1659_v14 = vmul.f32 %v3373_v43, %v1643_v4  ;;  %2383 = vrsqrt.f32 %v1615_v8  ;;  %v1600_v48 = vmul.f32 0.0078125, %v1577_v29 }
 0x2d3   : > { %v2378_v5 = vpop.eup %2377 }
 0x2d4   : > { %v1675_v22 = vadd.f32 %v3379_v49, %v1659_v14  ;;  %v1644_v12 = vmul.f32 %v2378_v5, %v3311_v6  ;;  %v1616_v26 = vadd.f32 1e-12, %v1600_v48 }
 0x2d5   : > { %v1579_v46 = vpop.xlane.xlu1 %1578 }
 0x2d6   : > { %1957 = vst [vmem:[%s3386_s7 + $0x98] sm:$0xff] %v1675_v22  ;;  %v1660_v32 = vmul.f32 %v3373_v43, %v1644_v12  ;;  %2385 = vrsqrt.f32 %v1616_v26  ;;  %v1601_v59 = vmul.f32 0.0078125, %v1579_v46 }
 0x2d7   : > { %v2380_v51 = vpop.eup %2379 }
 0x2d8   : > { %v1676_v45 = vadd.f32 %v3379_v49, %v1660_v32  ;;  %v1645_v16 = vmul.f32 %v2380_v51, %v3316_v15  ;;  %v1617_v17 = vadd.f32 1e-12, %v1601_v59 }
 0x2d9   : > { %v1581_v24 = vpop.xlane.xlu0 %1580 }
 0x2da   : > { %1958 = vst [vmem:[%s3386_s7 + $0xa0] sm:$0xff] %v1676_v45  ;;  %v1661_v18 = vmul.f32 %v3373_v43, %v1645_v16  ;;  %2387 = vrsqrt.f32 %v1617_v17  ;;  %v1602_v6 = vmul.f32 0.0078125, %v1581_v24 }
 0x2db   : > { %v2382_v62 = vpop.eup %2381 }
 0x2dc   : > { %v1677_v61 = vadd.f32 %v3379_v49, %v1661_v18  ;;  %v1646_v19 = vmul.f32 %v2382_v62, %v3321_v23  ;;  %v1618_v50 = vadd.f32 1e-12, %v1602_v6 }
 0x2dd   : > { %v1583_v44 = vpop.xlane.xlu1 %1582 }
 0x2de   : > { %1959 = vst [vmem:[%s3386_s7 + $0xa8] sm:$0xff] %v1677_v61  ;;  %v1662_v25 = vmul.f32 %v3373_v43, %v1646_v19  ;;  %2389 = vrsqrt.f32 %v1618_v50  ;;  %v1603_v15 = vmul.f32 0.0078125, %v1583_v44 }
 0x2df   : > { %v2384_v35 = vpop.eup %2383 }
 0x2e0   : > { %v1678_v38 = vadd.f32 %v3379_v49, %v1662_v25  ;;  %v1647_v7 = vmul.f32 %v2384_v35, %v3326_v30  ;;  %v1619_v58 = vadd.f32 1e-12, %v1603_v15 }
 0x2e1   : > { %v1585_v3 = vpop.xlane.xlu0 %1584 }
 0x2e2   : > { %1960 = vst [vmem:[%s3386_s7 + $0xb0] sm:$0xff] %v1678_v38  ;;  %v1663_v56 = vmul.f32 %v3373_v43, %v1647_v7  ;;  %2391 = vrsqrt.f32 %v1619_v58  ;;  %v1604_v23 = vmul.f32 0.0078125, %v1585_v3 }
 0x2e3   : > { %v2386_v27 = vpop.eup %2385 }
 0x2e4   : > { %v1679_v28 = vadd.f32 %v3379_v49, %v1663_v56  ;;  %v1648_v10 = vmul.f32 %v2386_v27, %v3331_v53  ;;  %v1620_v34 = vadd.f32 1e-12, %v1604_v23 }
 0x2e5   : > { %v1587_v36 = vpop.xlane.xlu1 %1586 }
 0x2e6   : > { %1961 = vst [vmem:[%s3386_s7 + $0xb8] sm:$0xff] %v1679_v28  ;;  %v1664_v42 = vmul.f32 %v3373_v43, %v1648_v10  ;;  %2393 = vrsqrt.f32 %v1620_v34  ;;  %v1605_v30 = vmul.f32 0.0078125, %v1587_v36 }
 0x2e7   : > { %v2388_v20 = vpop.eup %2387 }
 0x2e8   : > { %v1680_v0 = vadd.f32 %v3379_v49, %v1664_v42  ;;  %v1649_v47 = vmul.f32 %v2388_v20, %v3336_v1  ;;  %v1621_v31 = vadd.f32 1e-12, %v1605_v30 }
 0x2e9   : > { %v1589_v37 = vpop.xlane.xlu0 %1588 }
 0x2ea   : > { %1962 = vst [vmem:[%s3386_s7 + $0xc0] sm:$0xff] %v1680_v0  ;;  %v1665_v54 = vmul.f32 %v3373_v43, %v1649_v47  ;;  %2395 = vrsqrt.f32 %v1621_v31  ;;  %v1606_v53 = vmul.f32 0.0078125, %v1589_v37 }
 0x2eb   : > { %v2390_v55 = vpop.eup %2389 }
 0x2ec   : > { %v1681_v39 = vadd.f32 %v3379_v49, %v1665_v54  ;;  %v1650_v57 = vmul.f32 %v2390_v55, %v3341_v13  ;;  %v1622_v9 = vadd.f32 1e-12, %v1606_v53 }
 0x2ed   : > { %v1591_v60 = vpop.xlane.xlu1 %1590 }
 0x2ee   : > { %1963 = vst [vmem:[%s3386_s7 + $0xc8] sm:$0xff] %v1681_v39  ;;  %v1666_v40 = vmul.f32 %v3373_v43, %v1650_v57  ;;  %2397 = vrsqrt.f32 %v1622_v9  ;;  %v1607_v1 = vmul.f32 0.0078125, %v1591_v60 }
 0x2ef   : > { %v2392_v63 = vpop.eup %2391 }
 0x2f0   : > { %v1682_v11 = vadd.f32 %v3379_v49, %v1666_v40  ;;  %v1651_v4 = vmul.f32 %v2392_v63, %v3346_v21  ;;  %v1623_v8 = vadd.f32 1e-12, %v1607_v1 }
 0x2f2   : > { %1964 = vst [vmem:[%s3386_s7 + $0xd0] sm:$0xff] %v1682_v11  ;;  %v1667_v29 = vmul.f32 %v3373_v43, %v1651_v4  ;;  %2399 = vrsqrt.f32 %v1623_v8 }
 0x2f3   : > { %v2394_v13 = vpop.eup %2393 }
 0x2f4   : > { %v1683_v14 = vadd.f32 %v3379_v49, %v1667_v29  ;;  %v1652_v48 = vmul.f32 %v2394_v13, %v3351_v41 }
 0x2f6   : > { %1965 = vst [vmem:[%s3386_s7 + $0xd8] sm:$0xff] %v1683_v14  ;;  %v1668_v5 = vmul.f32 %v3373_v43, %v1652_v48 }
 0x2f7   : > { %v2396_v22 = vpop.eup %2395 }
 0x2f8   : > { %v1684_v21 = vadd.f32 %v3379_v49, %v1668_v5  ;;  %v1653_v12 = vmul.f32 %v2396_v22, %v3356_v52 }
 0x2fa   : > { %1966 = vst [vmem:[%s3386_s7 + $0xe0] sm:$0xff] %v1684_v21  ;;  %v1669_v26 = vmul.f32 %v3373_v43, %v1653_v12 }
 0x2fb   : > { %v2398_v46 = vpop.eup %2397 }
 0x2fc   : > { %v1685_v32 = vadd.f32 %v3379_v49, %v1669_v26  ;;  %v1654_v41 = vmul.f32 %v2398_v46, %v3361_v2 }
 0x2fe   : > { %1967 = vst [vmem:[%s3386_s7 + $0xe8] sm:$0xff] %v1685_v32  ;;  %v1670_v59 = vmul.f32 %v3373_v43, %v1654_v41 }
 0x2ff   : > { %v2400_v51 = vpop.eup %2399 }
 0x300   : > { %v1686_v45 = vadd.f32 %v3379_v49, %v1670_v59  ;;  %v1655_v16 = vmul.f32 %v2400_v51, %v3366_v33 }
 0x302   : > { %1968 = vst [vmem:[%s3386_s7 + $0xf0] sm:$0xff] %v1686_v45  ;;  %v1671_v52 = vmul.f32 %v3373_v43, %v1655_v16 }
 0x304   : > { %v1687_v2 = vadd.f32 %v3379_v49, %v1671_v52 }
 0x306   : > { %1969 = vst [vmem:[%s3386_s7 + $0xf8] sm:$0xff] %v1687_v2 }
 0x307   : > { %2496 = shalt.err (!%p2493_p11)
}
 0x308   : > { %s2497_s15 = scalar_lea.hbm %s3515_s28, 4096  ;;  %s2501_s20 = scalar_lea.hbm %s3568_s6, 8192 }
 0x309   : > { %p2498_p3 = scmp.ne.s32.totalorder %s3515_s28, %s2497_s15  ;;  %p2502_p10 = scmp.lt.s32.totalorder %s3515_s28, %s3568_s6 }
 0x30a   : > { %p2503_p6 = scmp.lt.s32.totalorder %s2501_s20, %s2497_s15 }
 0x30b   : > { %p2499_p12 = pnand %p2498_p3, %p3589_p8 }
 0x30c   : > { %p2504_p2 = por %p2503_p6, %p2502_p10 }
 0x30d   : > { %p2500_p4 = pneg %p2499_p12 }
 0x30f   : > { %p2505_p9 = pnand %p2504_p2, %p2500_p4 }
 0x311   : > { %2508 = shalt.err (!%p2505_p9)
}
 0x312   : > { %s2567_s27 = smov 128   ;;  %s2568_s7 = smov 8  }
 0x313   : > { %2243 = dma.vmem_to_hbm [thread:$0]  (%p3589_p8), %s3517_s19, 4096, %s3515_s28, %s1706_s29, %s2567_s27, %s2567_s27, %s2568_s7  }
 0x314 PF: > { %s1734_s16 = sand.u32 1, %s2543_s21   ;;  %p3590_p5 = scmp.ne.s32.totalorder %s3581_s13, 0 }
 0x315   : > { %p3591_p13 = scmp.ge.s32.totalorder %s2555_s24, 2  ;;  %s1735_s0 = scalar_lea.sflag [#allocation4], %s1734_s16 }
 0x317   : > { %p2257_p1 = pnand %p3591_p13, %p3590_p5 }
 0x319   : > { %p2258_p0 = pneg %p2257_p1 }
 0x31b   : > { %2538 = dma.done.wait (%p2258_p0), %s1735_s0, 4096  }
 0x31c   : > { %2540 = vsyncadd (%p2258_p0), %s1735_s0, 4294963200  ;;  %s3592_s23 = sld [smem:[#allocation13_spill]]  ;;  %p20_p7 = scmp.ge.s32.totalorder %s2625_s25, 4  }
 0x31d   : > { %s3593_s8 = sld [smem:[#allocation14_spill]]  ;;  %s3594_s21 = smov %s2547_s22 }
 0x31e   : > { %s3597_s24 = smov %s2625_s25 }
 0x31f   :  { %22 = sbr.rel (!%p20_p7) target bundleno = 8 (0x8), region = 108 }
 0x322   : > { %s3595_s22 = smov %s3592_s23 }
 0x323   : > { %s3596_s23 = smov %s3593_s8 }
 0x324   :  { %1740 = vsyncpa [#allocation3], 1 }
 0x325   :  { %1742 = vsyncpa [#allocation3 + $0x1], 1 }
 0x326   :  { %1743 = vsyncpa [#allocation6], 1 }
 0x327   :  { %1744 = vsyncpa [#allocation4], 1 }
 0x328   :  { %1746 = vsyncpa [#allocation4 + $0x1], 1 }

</bundles_post_ra>
